<compile_context>
chip_gen: v5e
topology: v5e:2x2
jax: 0.10.0
libtpu: 0.0.40
codegen_flags: <defaults>
</compile_context>

<pallas_src>
import functools
import math

import jax
import jax.numpy as jnp
from jax.experimental import pallas as pl
from jax.experimental.pallas import tpu as pltpu


# ----------------------------------------------------------------------------
# Parameter-slab layout (shared by prepare_params and the kernel).
# ----------------------------------------------------------------------------
def _round8(n):
    return ((n + 7) // 8) * 8


def _slab_layout(input_size, output_size, num_hidden):
    """Row-offset layout of the single packed parameter slab.

    Every section starts at a multiple of 8 rows (sublane-tile aligned).
    Slab width = 3*H (gate-fused lane width); narrow matrices use cols [0:c].
    """
    H, Hh, I, O = num_hidden, num_hidden // 2, input_size, output_size
    W3 = 3 * H
    sections = [
        ("enc_wih", I, W3), ("enc_whh", H, W3),
        ("d1_wih", Hh, W3), ("d1_whh", H, W3),
        ("d2_wih", Hh, W3), ("d2_whh", H, W3),
        ("biases", 6, W3),                       # 3x fused gi bias + 3x b_hn
        ("ctx_w", H, Hh), ("fcin_w", H, I), ("fcout_w", H, O),
        ("small_b", 3, max(Hh, I, O)),           # ctx_b / fcin_b / fcout_b
    ]
    layout, off = {}, 0
    for name, rows, cols in sections:
        layout[name] = (off, rows, cols)
        off += _round8(rows)
    return layout, off, W3


# ----------------------------------------------------------------------------
# Fused-gate GRU step (PyTorch GRUCell math), input-side gi precomputed.
# ----------------------------------------------------------------------------
def _gru_step(h, gi_r, gi_z, gi_n, u_fused, b_hn, H):
    """ONE h @ [U_r|U_z|U_n] MXU op per step; gates split with lane slices.
    gi_r/gi_z already contain (b_ir+b_hr)/(b_iz+b_hz); gi_n contains b_in;
    b_hn is pre-broadcast to (B, H)."""
    gh = jnp.dot(h, u_fused, preferred_element_type=jnp.float32)   # (B, 3H)
    r = jax.nn.sigmoid(gi_r + gh[:, :H])
    z = jax.nn.sigmoid(gi_z + gh[:, H:2 * H])
    n = jnp.tanh(gi_n + r * (gh[:, 2 * H:] + b_hn))
    return (1.0 - z) * n + z * h


# ----------------------------------------------------------------------------
# Pallas kernel: whole ForeCastRNN forward (use_embedding=False).
# ----------------------------------------------------------------------------
def _forecast_kernel(
    x_ref,          # (T*B, I) time-major rows
    w_ref,          # (total_rows, 3H) packed parameter slab
    out_ref,        # ((T+F)*B, I) combined output: decoded_inputs | cumsum outs
    *,
    batch, past_len, future_len, input_size, output_size, num_hidden, layout,
):
    B, T, F = batch, past_len, future_len
    H, Hh = num_hidden, num_hidden // 2
    I, O = input_size, output_size

    def sec(name):
        o, r, c = layout[name]
        return w_ref[o:o + r, 0:c]              # static slice -> free view

    x = x_ref[...]                              # (T*B, I)

    # ---- biases (folded gi bias rows + separate b_hn rows) ----------------
    b0 = layout["biases"][0]
    enc_bgi = w_ref[b0 + 0:b0 + 1, :]           # (1, 3H)
    d1_bgi = w_ref[b0 + 1:b0 + 2, :]
    d2_bgi = w_ref[b0 + 2:b0 + 3, :]
    enc_bhn = jnp.broadcast_to(w_ref[b0 + 3:b0 + 4, 0:H], (B, H))
    d1_bhn = jnp.broadcast_to(w_ref[b0 + 4:b0 + 5, 0:H], (B, H))
    d2_bhn = jnp.broadcast_to(w_ref[b0 + 5:b0 + 6, 0:H], (B, H))

    s0 = layout["small_b"][0]
    ctx_b = w_ref[s0 + 0:s0 + 1, 0:Hh]
    fcin_b = w_ref[s0 + 1:s0 + 2, 0:I]
    fcout_b = w_ref[s0 + 2:s0 + 3, 0:O]

    # ---------------- EncoderRNN ------------------------------------------
    # Input-side gate contributions for ALL timesteps: ONE fused batched
    # matmul (biases folded in).  Only the fused h-side matmul stays in-loop.
    e_gi = (jnp.dot(x, sec("enc_wih"), preferred_element_type=jnp.float32)
            + enc_bgi)                                        # (T*B, 3H)
    e_gr, e_gz, e_gn = e_gi[:, :H], e_gi[:, H:2 * H], e_gi[:, 2 * H:]
    enc_whh = sec("enc_whh")                                  # (H, 3H)

    h = jnp.zeros((B, H), jnp.float32)
    for t in range(T):                                        # unrolled
        lo, hi = t * B, (t + 1) * B
        h = _gru_step(h, e_gr[lo:hi], e_gz[lo:hi], e_gn[lo:hi],
                      enc_whh, enc_bhn, H)
    context = h                                               # (B, H)

    # ---------------- context encoder -------------------------------------
    ec = jnp.maximum(
        jnp.dot(context, sec("ctx_w"), preferred_element_type=jnp.float32)
        + ctx_b, 0.0)                                         # (B, H//2)

    # ---------------- decoders: loop-invariant fused gi --------------------
    d1_gi = (jnp.dot(ec, sec("d1_wih"), preferred_element_type=jnp.float32)
             + d1_bgi)
    d2_gi = (jnp.dot(ec, sec("d2_wih"), preferred_element_type=jnp.float32)
             + d2_bgi)
    d1_gr, d1_gz, d1_gn = d1_gi[:, :H], d1_gi[:, H:2 * H], d1_gi[:, 2 * H:]
    d2_gr, d2_gz, d2_gn = d2_gi[:, :H], d2_gi[:, H:2 * H], d2_gi[:, 2 * H:]
    d1_whh, d2_whh = sec("d1_whh"), sec("d2_whh")

    # Interleave the two independent recurrences; hidden states stay in vregs.
    h1, h2 = context, context
    hs1, hs2 = [], []
    for t in range(max(T, F)):                                # unrolled
        if t < T:
            h1 = _gru_step(h1, d1_gr, d1_gz, d1_gn, d1_whh, d1_bhn, H)
            hs1.append(h1)
        if t < F:
            h2 = _gru_step(h2, d2_gr, d2_gz, d2_gn, d2_whh, d2_bhn, H)
            hs2.append(h2)

    hs1_slab = jnp.concatenate(hs1, axis=0)                   # (T*B, H)
    hs2_slab = jnp.concatenate(hs2, axis=0)                   # (F*B, H)

    # fc_in / fc_out hoisted: one batched matmul each.
    dec_in = (jnp.dot(hs1_slab, sec("fcin_w"),
                      preferred_element_type=jnp.float32) + fcin_b)   # (T*B, I)
    preds = (jnp.dot(jnp.maximum(hs2_slab, 0.0), sec("fcout_w"),
                     preferred_element_type=jnp.float32) + fcout_b)   # (F*B, O)

    # ---------------- fused Cumsum (seeded with last observed bbox) --------
    cum = x[(T - 1) * B:T * B, 0:O]                           # prev_bboxes[:, -1, :4]
    outs = []
    for t in range(F):                                        # tiny, unrolled
        cum = cum + preds[t * B:(t + 1) * B, :]
        outs.append(cum)
    out_slab = jnp.concatenate(outs, axis=0)                  # (F*B, O)
    if O < I:                                                 # pad lanes to I
        out_slab = jnp.concatenate(
            [out_slab, jnp.zeros((F * B, I - O), jnp.float32)], axis=1)

    # Single contiguous store of the combined output.
    out_ref[...] = jnp.concatenate([dec_in, out_slab], axis=0)
    # TODO(synk): use_embedding=True branch (concat dla_features onto the
    # encoded context for decoder2) is not implemented in this kernel.


# ----------------------------------------------------------------------------
# Parameter construction (deterministic, PyTorch-default-like uniform init).
# ----------------------------------------------------------------------------
def _uniform(key, shape, bound):
    return jax.random.uniform(key, shape, jnp.float32, -bound, bound)


def init_params(key, input_size, output_size, num_hidden):
    H = num_hidden
    Hh = H // 2
    ks = jax.random.split(key, 24)
    k = 1.0 / math.sqrt(H)

    def gru(i, in_sz):
        return dict(
            w_ih=_uniform(ks[i + 0], (3 * H, in_sz), k),
            w_hh=_uniform(ks[i + 1], (3 * H, H), k),
            b_ih=_uniform(ks[i + 2], (3 * H,), k),
            b_hh=_uniform(ks[i + 3], (3 * H,), k),
        )

    def linear(i, in_sz, out_sz):
        kk = 1.0 / math.sqrt(in_sz)
        return dict(w=_uniform(ks[i + 0], (out_sz, in_sz), kk),
                    b=_uniform(ks[i + 1], (out_sz,), kk))

    return dict(
        encoder1=gru(0, input_size),        # EncoderRNN.encoder1
        decoder1=gru(4, Hh),                # DecoderRNN.decoder1
        decoder2=gru(8, Hh),                # DecoderRNN.decoder2 (no embedding)
        context_encoder=linear(12, H, Hh),
        fc_in=linear(14, H, input_size),
        fc_out=linear(16, H, output_size),
        dla_encoder=linear(18, Hh, Hh),     # present in __init__, unused in fwd
    )


# ----------------------------------------------------------------------------
# One-time parameter packing into ONE slab (done OUTSIDE the jitted forward).
# ----------------------------------------------------------------------------
def prepare_params(params):
    """Fuse GRU gate weights along lanes ((in,3H), gate order r|z|n), fold
    biases, transpose Linear weights, and pack EVERYTHING into a single
    (total_rows, 3H) f32 slab with 8-row-aligned sections."""
    H = params["encoder1"]["w_hh"].shape[1]
    Hh = H // 2
    I = params["encoder1"]["w_ih"].shape[1]
    O = params["fc_out"]["w"].shape[0]
    layout, total_rows, W3 = _slab_layout(I, O, H)

    def gru_fused(p):
        w_ih, w_hh = p["w_ih"], p["w_hh"]
        b_ih, b_hh = p["b_ih"], p["b_hh"]
        wi = jnp.concatenate([w_ih[g * H:(g + 1) * H, :].T for g in range(3)], 1)
        wh = jnp.concatenate([w_hh[g * H:(g + 1) * H, :].T for g in range(3)], 1)
        b_gi = jnp.concatenate([b_ih[:H] + b_hh[:H],            # r: b_ir + b_hr
                                b_ih[H:2 * H] + b_hh[H:2 * H],  # z: b_iz + b_hz
                                b_ih[2 * H:]], 0)               # n: b_in
        b_hn = b_hh[2 * H:]
        return wi, wh, b_gi, b_hn

    e_wi, e_wh, e_bgi, e_bhn = gru_fused(params["encoder1"])
    d1_wi, d1_wh, d1_bgi, d1_bhn = gru_fused(params["decoder1"])
    d2_wi, d2_wh, d2_bgi, d2_bhn = gru_fused(params["decoder2"])

    slab = jnp.zeros((total_rows, W3), jnp.float32)

    def put(sl, name, mat):
        o, r, c = layout[name]
        return sl.at[o:o + r, 0:c].set(jnp.asarray(mat, jnp.float32))

    slab = put(slab, "enc_wih", e_wi)
    slab = put(slab, "enc_whh", e_wh)
    slab = put(slab, "d1_wih", d1_wi)
    slab = put(slab, "d1_whh", d1_wh)
    slab = put(slab, "d2_wih", d2_wi)
    slab = put(slab, "d2_whh", d2_wh)

    b0 = layout["biases"][0]
    slab = slab.at[b0 + 0, 0:3 * H].set(e_bgi)
    slab = slab.at[b0 + 1, 0:3 * H].set(d1_bgi)
    slab = slab.at[b0 + 2, 0:3 * H].set(d2_bgi)
    slab = slab.at[b0 + 3, 0:H].set(e_bhn)
    slab = slab.at[b0 + 4, 0:H].set(d1_bhn)
    slab = slab.at[b0 + 5, 0:H].set(d2_bhn)

    slab = put(slab, "ctx_w", params["context_encoder"]["w"].T)
    slab = put(slab, "fcin_w", params["fc_in"]["w"].T)
    slab = put(slab, "fcout_w", params["fc_out"]["w"].T)

    s0 = layout["small_b"][0]
    slab = slab.at[s0 + 0, 0:Hh].set(params["context_encoder"]["b"])
    slab = slab.at[s0 + 1, 0:I].set(params["fc_in"]["b"])
    slab = slab.at[s0 + 2, 0:O].set(params["fc_out"]["b"])

    return slab


# ----------------------------------------------------------------------------
# Wrapper: layout plumbing + pallas_call.
# ----------------------------------------------------------------------------
def forecast_rnn(prev_bboxes, slab, *, future_length, output_size):
    prev_bboxes = prev_bboxes.astype(jnp.float32)
    B, T, I = prev_bboxes.shape
    H = slab.shape[1] // 3
    O = output_size
    assert O == 4 and I >= 4, (
        "Cumsum seed prev_bboxes[:, -1, :4] requires output_size == 4")

    layout, total_rows, _ = _slab_layout(I, O, H)
    assert slab.shape[0] == total_rows, "slab/layout mismatch"

    # time-major 2-D slab: row t*B + b  <->  prev_bboxes[b, t, :]
    x2d = jnp.transpose(prev_bboxes, (1, 0, 2)).reshape(T * B, I)

    kernel = functools.partial(
        _forecast_kernel, batch=B, past_len=T, future_len=future_length,
        input_size=I, output_size=O, num_hidden=H, layout=layout)

    vmem = pl.BlockSpec(memory_space=pltpu.MemorySpace.VMEM)
    comb = pl.pallas_call(
        kernel,
        out_shape=jax.ShapeDtypeStruct(((T + future_length) * B, I),
                                       jnp.float32),
        in_specs=[vmem, vmem],
        out_specs=vmem,
    )(x2d, slab)

    dec2d = comb[:T * B, :]                       # (T*B, I)
    out2d = comb[T * B:, :O]                      # (F*B, O)
    decoded_inputs = dec2d.reshape(T, B, I).transpose(1, 0, 2)
    outputs = out2d.reshape(future_length, B, O).transpose(1, 0, 2)
    return [decoded_inputs, outputs]


# ----------------------------------------------------------------------------
# Pure-JAX reference (mirrors the PyTorch forward exactly) for verification.
# ----------------------------------------------------------------------------
def _gru_ref(x, h, p):
    H = h.shape[-1]
    gi = x @ p["w_ih"].T + p["b_ih"]
    gh = h @ p["w_hh"].T + p["b_hh"]
    r = jax.nn.sigmoid(gi[:, :H] + gh[:, :H])
    z = jax.nn.sigmoid(gi[:, H:2 * H] + gh[:, H:2 * H])
    n = jnp.tanh(gi[:, 2 * H:] + r * gh[:, 2 * H:])
    return (1.0 - z) * n + z * h


def forecast_rnn_reference(prev_bboxes, params, future_length):
    B, T_past, _ = prev_bboxes.shape
    H = params["encoder1"]["w_hh"].shape[1]

    ctx = jnp.zeros((B, H), jnp.float32)
    for i in range(T_past):
        ctx = _gru_ref(prev_bboxes[:, i, :], ctx, params["encoder1"])

    pc = params["context_encoder"]
    enc_ctx = jnp.maximum(ctx @ pc["w"].T + pc["b"], 0.0)

    h = ctx
    dec_inputs = []
    for _ in range(T_past):
        h = _gru_ref(enc_ctx, h, params["decoder1"])
        dec_inputs.append(h @ params["fc_in"]["w"].T + params["fc_in"]["b"])
    dec_inputs = jnp.stack(dec_inputs, 1)

    h = ctx
    outs = []
    for _ in range(future_length):
        h = _gru_ref(enc_ctx, h, params["decoder2"])
        outs.append(jnp.maximum(h, 0.0) @ params["fc_out"]["w"].T
                    + params["fc_out"]["b"])
    outs = jnp.stack(outs, 1)
    last = prev_bboxes[:, -1:, :4]
    outs = last + jnp.cumsum(outs, axis=1)
    return [dec_inputs, outs]


# ----------------------------------------------------------------------------
if __name__ == "__main__":
    B, T_PAST = 2, 8
    INPUT_SIZE, OUTPUT_SIZE = 4, 4        # bbox coords (output must be 4)
    NUM_HIDDEN = 32
    FUTURE_LENGTH = 5

    key = jax.random.PRNGKey(0)
    k_data, k_param = jax.random.split(key)
    prev_bboxes = jax.random.normal(k_data, (B, T_PAST, INPUT_SIZE), jnp.float32)
    params = init_params(k_param, INPUT_SIZE, OUTPUT_SIZE, NUM_HIDDEN)

    slab = prepare_params(params)         # one-time packing, outside jit

    run = jax.jit(functools.partial(forecast_rnn,
                                    future_length=FUTURE_LENGTH,
                                    output_size=OUTPUT_SIZE))
    dec_inputs, outputs = run(prev_bboxes, slab)
    jax.block_until_ready((dec_inputs, outputs))

    ref_dec, ref_out = forecast_rnn_reference(prev_bboxes, params, FUTURE_LENGTH)
    assert dec_inputs.shape == (B, T_PAST, INPUT_SIZE)
    assert outputs.shape == (B, FUTURE_LENGTH, OUTPUT_SIZE)
    assert jnp.allclose(dec_inputs, ref_dec, atol=1e-3, rtol=1e-3)
    assert jnp.allclose(outputs, ref_out, atol=1e-3, rtol=1e-3)

    print("KERNEL_OK")
</pallas_src>

<mosaic_0001>
module attributes {stable_mosaic.version = 11 : i64} {
  func.func @_forecast_kernel(%arg0: memref<16x4xf32, #tpu.memory_space<vmem>>, %arg1: memref<248x96xf32, #tpu.memory_space<vmem>>, %arg2: memref<26x4xf32, #tpu.memory_space<vmem>>) attributes {dimension_semantics = [], scalar_prefetch = 0 : i64, scratch_operands = 0 : i64, tpu.core_type = #tpu.core_type<tc>} {
    %c0 = arith.constant 0 : index
    %c0_0 = arith.constant 0 : index
    %0 = vector.load %arg0[%c0, %c0_0] : memref<16x4xf32, #tpu.memory_space<vmem>>, vector<16x4xf32>
    %c136 = arith.constant 136 : index
    %c0_1 = arith.constant 0 : index
    %1 = vector.load %arg1[%c136, %c0_1] : memref<248x96xf32, #tpu.memory_space<vmem>>, vector<1x96xf32>
    %c137 = arith.constant 137 : index
    %c0_2 = arith.constant 0 : index
    %2 = vector.load %arg1[%c137, %c0_2] : memref<248x96xf32, #tpu.memory_space<vmem>>, vector<1x96xf32>
    %c138 = arith.constant 138 : index
    %c0_3 = arith.constant 0 : index
    %3 = vector.load %arg1[%c138, %c0_3] : memref<248x96xf32, #tpu.memory_space<vmem>>, vector<1x96xf32>
    %c139 = arith.constant 139 : index
    %c0_4 = arith.constant 0 : index
    %4 = vector.load %arg1[%c139, %c0_4] : memref<248x96xf32, #tpu.memory_space<vmem>>, vector<1x32xf32>
    %5 = vector.shape_cast %4 : vector<1x32xf32> to vector<1x32xf32>
    %6 = vector.broadcast %5 : vector<1x32xf32> to vector<2x32xf32>
    %c140 = arith.constant 140 : index
    %c0_5 = arith.constant 0 : index
    %7 = vector.load %arg1[%c140, %c0_5] : memref<248x96xf32, #tpu.memory_space<vmem>>, vector<1x32xf32>
    %8 = vector.shape_cast %7 : vector<1x32xf32> to vector<1x32xf32>
    %9 = vector.broadcast %8 : vector<1x32xf32> to vector<2x32xf32>
    %c141 = arith.constant 141 : index
    %c0_6 = arith.constant 0 : index
    %10 = vector.load %arg1[%c141, %c0_6] : memref<248x96xf32, #tpu.memory_space<vmem>>, vector<1x32xf32>
    %11 = vector.shape_cast %10 : vector<1x32xf32> to vector<1x32xf32>
    %12 = vector.broadcast %11 : vector<1x32xf32> to vector<2x32xf32>
    %c240 = arith.constant 240 : index
    %c0_7 = arith.constant 0 : index
    %13 = vector.load %arg1[%c240, %c0_7] : memref<248x96xf32, #tpu.memory_space<vmem>>, vector<1x16xf32>
    %c241 = arith.constant 241 : index
    %c0_8 = arith.constant 0 : index
    %14 = vector.load %arg1[%c241, %c0_8] : memref<248x96xf32, #tpu.memory_space<vmem>>, vector<1x4xf32>
    %c242 = arith.constant 242 : index
    %c0_9 = arith.constant 0 : index
    %15 = vector.load %arg1[%c242, %c0_9] : memref<248x96xf32, #tpu.memory_space<vmem>>, vector<1x4xf32>
    %c0_10 = arith.constant 0 : index
    %c0_11 = arith.constant 0 : index
    %16 = vector.load %arg1[%c0_10, %c0_11] : memref<248x96xf32, #tpu.memory_space<vmem>>, vector<4x96xf32>
    %cst = arith.constant dense<0.000000e+00> : vector<16x96xf32>
    %17 = tpu.matmul %0, %16, %cst {dimension_numbers = #tpu.dot_dimension_numbers<[1], [0], [0], [1], [0, 0, 1, 1], [], []>} : vector<16x4xf32>, vector<4x96xf32>, vector<16x96xf32> -> vector<16x96xf32>
    %18 = vector.broadcast %1 : vector<1x96xf32> to vector<16x96xf32>
    %19 = arith.addf %17, %18 : vector<16x96xf32>
    %20 = vector.extract_strided_slice %19 {offsets = [0, 0], sizes = [16, 32], strides = [1, 1]} : vector<16x96xf32> to vector<16x32xf32>
    %21 = vector.extract_strided_slice %19 {offsets = [0, 32], sizes = [16, 32], strides = [1, 1]} : vector<16x96xf32> to vector<16x32xf32>
    %22 = vector.extract_strided_slice %19 {offsets = [0, 64], sizes = [16, 32], strides = [1, 1]} : vector<16x96xf32> to vector<16x32xf32>
    %c8 = arith.constant 8 : index
    %c0_12 = arith.constant 0 : index
    %23 = vector.load %arg1[%c8, %c0_12] : memref<248x96xf32, #tpu.memory_space<vmem>>, vector<32x96xf32>
    %cst_13 = arith.constant 0.000000e+00 : f32
    %24 = vector.broadcast %cst_13 : f32 to vector<2x32xf32>
    %25 = vector.extract_strided_slice %20 {offsets = [0, 0], sizes = [2, 32], strides = [1, 1]} : vector<16x32xf32> to vector<2x32xf32>
    %26 = vector.extract_strided_slice %21 {offsets = [0, 0], sizes = [2, 32], strides = [1, 1]} : vector<16x32xf32> to vector<2x32xf32>
    %27 = vector.extract_strided_slice %22 {offsets = [0, 0], sizes = [2, 32], strides = [1, 1]} : vector<16x32xf32> to vector<2x32xf32>
    %cst_14 = arith.constant dense<0.000000e+00> : vector<2x96xf32>
    %28 = tpu.matmul %24, %23, %cst_14 {dimension_numbers = #tpu.dot_dimension_numbers<[1], [0], [0], [1], [0, 0, 1, 1], [], []>} : vector<2x32xf32>, vector<32x96xf32>, vector<2x96xf32> -> vector<2x96xf32>
    %29 = vector.extract_strided_slice %28 {offsets = [0, 0], sizes = [2, 32], strides = [1, 1]} : vector<2x96xf32> to vector<2x32xf32>
    %30 = arith.addf %25, %29 : vector<2x32xf32>
    %31 = arith.negf %30 : vector<2x32xf32>
    %32 = math.exp %31 : vector<2x32xf32>
    %cst_15 = arith.constant 1.000000e+00 : f32
    %33 = vector.broadcast %cst_15 : f32 to vector<2x32xf32>
    %34 = arith.addf %33, %32 : vector<2x32xf32>
    %35 = arith.divf %33, %34 : vector<2x32xf32>
    %36 = vector.extract_strided_slice %28 {offsets = [0, 32], sizes = [2, 32], strides = [1, 1]} : vector<2x96xf32> to vector<2x32xf32>
    %37 = arith.addf %26, %36 : vector<2x32xf32>
    %38 = arith.negf %37 : vector<2x32xf32>
    %39 = math.exp %38 : vector<2x32xf32>
    %cst_16 = arith.constant 1.000000e+00 : f32
    %40 = vector.broadcast %cst_16 : f32 to vector<2x32xf32>
    %41 = arith.addf %40, %39 : vector<2x32xf32>
    %42 = arith.divf %40, %41 : vector<2x32xf32>
    %43 = vector.extract_strided_slice %28 {offsets = [0, 64], sizes = [2, 32], strides = [1, 1]} : vector<2x96xf32> to vector<2x32xf32>
    %44 = arith.addf %43, %6 : vector<2x32xf32>
    %45 = arith.mulf %35, %44 : vector<2x32xf32>
    %46 = arith.addf %27, %45 : vector<2x32xf32>
    %47 = math.tanh %46 : vector<2x32xf32>
    %cst_17 = arith.constant 1.000000e+00 : f32
    %48 = vector.broadcast %cst_17 : f32 to vector<2x32xf32>
    %49 = arith.subf %48, %42 : vector<2x32xf32>
    %50 = arith.mulf %49, %47 : vector<2x32xf32>
    %51 = arith.mulf %42, %24 : vector<2x32xf32>
    %52 = arith.addf %50, %51 : vector<2x32xf32>
    %53 = vector.extract_strided_slice %20 {offsets = [2, 0], sizes = [2, 32], strides = [1, 1]} : vector<16x32xf32> to vector<2x32xf32>
    %54 = vector.extract_strided_slice %21 {offsets = [2, 0], sizes = [2, 32], strides = [1, 1]} : vector<16x32xf32> to vector<2x32xf32>
    %55 = vector.extract_strided_slice %22 {offsets = [2, 0], sizes = [2, 32], strides = [1, 1]} : vector<16x32xf32> to vector<2x32xf32>
    %cst_18 = arith.constant dense<0.000000e+00> : vector<2x96xf32>
    %56 = tpu.matmul %52, %23, %cst_18 {dimension_numbers = #tpu.dot_dimension_numbers<[1], [0], [0], [1], [0, 0, 1, 1], [], []>} : vector<2x32xf32>, vector<32x96xf32>, vector<2x96xf32> -> vector<2x96xf32>
    %57 = vector.extract_strided_slice %56 {offsets = [0, 0], sizes = [2, 32], strides = [1, 1]} : vector<2x96xf32> to vector<2x32xf32>
    %58 = arith.addf %53, %57 : vector<2x32xf32>
    %59 = arith.negf %58 : vector<2x32xf32>
    %60 = math.exp %59 : vector<2x32xf32>
    %cst_19 = arith.constant 1.000000e+00 : f32
    %61 = vector.broadcast %cst_19 : f32 to vector<2x32xf32>
    %62 = arith.addf %61, %60 : vector<2x32xf32>
    %63 = arith.divf %61, %62 : vector<2x32xf32>
    %64 = vector.extract_strided_slice %56 {offsets = [0, 32], sizes = [2, 32], strides = [1, 1]} : vector<2x96xf32> to vector<2x32xf32>
    %65 = arith.addf %54, %64 : vector<2x32xf32>
    %66 = arith.negf %65 : vector<2x32xf32>
    %67 = math.exp %66 : vector<2x32xf32>
    %cst_20 = arith.constant 1.000000e+00 : f32
    %68 = vector.broadcast %cst_20 : f32 to vector<2x32xf32>
    %69 = arith.addf %68, %67 : vector<2x32xf32>
    %70 = arith.divf %68, %69 : vector<2x32xf32>
    %71 = vector.extract_strided_slice %56 {offsets = [0, 64], sizes = [2, 32], strides = [1, 1]} : vector<2x96xf32> to vector<2x32xf32>
    %72 = arith.addf %71, %6 : vector<2x32xf32>
    %73 = arith.mulf %63, %72 : vector<2x32xf32>
    %74 = arith.addf %55, %73 : vector<2x32xf32>
    %75 = math.tanh %74 : vector<2x32xf32>
    %cst_21 = arith.constant 1.000000e+00 : f32
    %76 = vector.broadcast %cst_21 : f32 to vector<2x32xf32>
    %77 = arith.subf %76, %70 : vector<2x32xf32>
    %78 = arith.mulf %77, %75 : vector<2x32xf32>
    %79 = arith.mulf %70, %52 : vector<2x32xf32>
    %80 = arith.addf %78, %79 : vector<2x32xf32>
    %81 = vector.extract_strided_slice %20 {offsets = [4, 0], sizes = [2, 32], strides = [1, 1]} : vector<16x32xf32> to vector<2x32xf32>
    %82 = vector.extract_strided_slice %21 {offsets = [4, 0], sizes = [2, 32], strides = [1, 1]} : vector<16x32xf32> to vector<2x32xf32>
    %83 = vector.extract_strided_slice %22 {offsets = [4, 0], sizes = [2, 32], strides = [1, 1]} : vector<16x32xf32> to vector<2x32xf32>
    %cst_22 = arith.constant dense<0.000000e+00> : vector<2x96xf32>
    %84 = tpu.matmul %80, %23, %cst_22 {dimension_numbers = #tpu.dot_dimension_numbers<[1], [0], [0], [1], [0, 0, 1, 1], [], []>} : vector<2x32xf32>, vector<32x96xf32>, vector<2x96xf32> -> vector<2x96xf32>
    %85 = vector.extract_strided_slice %84 {offsets = [0, 0], sizes = [2, 32], strides = [1, 1]} : vector<2x96xf32> to vector<2x32xf32>
    %86 = arith.addf %81, %85 : vector<2x32xf32>
    %87 = arith.negf %86 : vector<2x32xf32>
    %88 = math.exp %87 : vector<2x32xf32>
    %cst_23 = arith.constant 1.000000e+00 : f32
    %89 = vector.broadcast %cst_23 : f32 to vector<2x32xf32>
    %90 = arith.addf %89, %88 : vector<2x32xf32>
    %91 = arith.divf %89, %90 : vector<2x32xf32>
    %92 = vector.extract_strided_slice %84 {offsets = [0, 32], sizes = [2, 32], strides = [1, 1]} : vector<2x96xf32> to vector<2x32xf32>
    %93 = arith.addf %82, %92 : vector<2x32xf32>
    %94 = arith.negf %93 : vector<2x32xf32>
    %95 = math.exp %94 : vector<2x32xf32>
    %cst_24 = arith.constant 1.000000e+00 : f32
    %96 = vector.broadcast %cst_24 : f32 to vector<2x32xf32>
    %97 = arith.addf %96, %95 : vector<2x32xf32>
    %98 = arith.divf %96, %97 : vector<2x32xf32>
    %99 = vector.extract_strided_slice %84 {offsets = [0, 64], sizes = [2, 32], strides = [1, 1]} : vector<2x96xf32> to vector<2x32xf32>
    %100 = arith.addf %99, %6 : vector<2x32xf32>
    %101 = arith.mulf %91, %100 : vector<2x32xf32>
    %102 = arith.addf %83, %101 : vector<2x32xf32>
    %103 = math.tanh %102 : vector<2x32xf32>
    %cst_25 = arith.constant 1.000000e+00 : f32
    %104 = vector.broadcast %cst_25 : f32 to vector<2x32xf32>
    %105 = arith.subf %104, %98 : vector<2x32xf32>
    %106 = arith.mulf %105, %103 : vector<2x32xf32>
    %107 = arith.mulf %98, %80 : vector<2x32xf32>
    %108 = arith.addf %106, %107 : vector<2x32xf32>
    %109 = vector.extract_strided_slice %20 {offsets = [6, 0], sizes = [2, 32], strides = [1, 1]} : vector<16x32xf32> to vector<2x32xf32>
    %110 = vector.extract_strided_slice %21 {offsets = [6, 0], sizes = [2, 32], strides = [1, 1]} : vector<16x32xf32> to vector<2x32xf32>
    %111 = vector.extract_strided_slice %22 {offsets = [6, 0], sizes = [2, 32], strides = [1, 1]} : vector<16x32xf32> to vector<2x32xf32>
    %cst_26 = arith.constant dense<0.000000e+00> : vector<2x96xf32>
    %112 = tpu.matmul %108, %23, %cst_26 {dimension_numbers = #tpu.dot_dimension_numbers<[1], [0], [0], [1], [0, 0, 1, 1], [], []>} : vector<2x32xf32>, vector<32x96xf32>, vector<2x96xf32> -> vector<2x96xf32>
    %113 = vector.extract_strided_slice %112 {offsets = [0, 0], sizes = [2, 32], strides = [1, 1]} : vector<2x96xf32> to vector<2x32xf32>
    %114 = arith.addf %109, %113 : vector<2x32xf32>
    %115 = arith.negf %114 : vector<2x32xf32>
    %116 = math.exp %115 : vector<2x32xf32>
    %cst_27 = arith.constant 1.000000e+00 : f32
    %117 = vector.broadcast %cst_27 : f32 to vector<2x32xf32>
    %118 = arith.addf %117, %116 : vector<2x32xf32>
    %119 = arith.divf %117, %118 : vector<2x32xf32>
    %120 = vector.extract_strided_slice %112 {offsets = [0, 32], sizes = [2, 32], strides = [1, 1]} : vector<2x96xf32> to vector<2x32xf32>
    %121 = arith.addf %110, %120 : vector<2x32xf32>
    %122 = arith.negf %121 : vector<2x32xf32>
    %123 = math.exp %122 : vector<2x32xf32>
    %cst_28 = arith.constant 1.000000e+00 : f32
    %124 = vector.broadcast %cst_28 : f32 to vector<2x32xf32>
    %125 = arith.addf %124, %123 : vector<2x32xf32>
    %126 = arith.divf %124, %125 : vector<2x32xf32>
    %127 = vector.extract_strided_slice %112 {offsets = [0, 64], sizes = [2, 32], strides = [1, 1]} : vector<2x96xf32> to vector<2x32xf32>
    %128 = arith.addf %127, %6 : vector<2x32xf32>
    %129 = arith.mulf %119, %128 : vector<2x32xf32>
    %130 = arith.addf %111, %129 : vector<2x32xf32>
    %131 = math.tanh %130 : vector<2x32xf32>
    %cst_29 = arith.constant 1.000000e+00 : f32
    %132 = vector.broadcast %cst_29 : f32 to vector<2x32xf32>
    %133 = arith.subf %132, %126 : vector<2x32xf32>
    %134 = arith.mulf %133, %131 : vector<2x32xf32>
    %135 = arith.mulf %126, %108 : vector<2x32xf32>
    %136 = arith.addf %134, %135 : vector<2x32xf32>
    %137 = vector.extract_strided_slice %20 {offsets = [8, 0], sizes = [2, 32], strides = [1, 1]} : vector<16x32xf32> to vector<2x32xf32>
    %138 = vector.extract_strided_slice %21 {offsets = [8, 0], sizes = [2, 32], strides = [1, 1]} : vector<16x32xf32> to vector<2x32xf32>
    %139 = vector.extract_strided_slice %22 {offsets = [8, 0], sizes = [2, 32], strides = [1, 1]} : vector<16x32xf32> to vector<2x32xf32>
    %cst_30 = arith.constant dense<0.000000e+00> : vector<2x96xf32>
    %140 = tpu.matmul %136, %23, %cst_30 {dimension_numbers = #tpu.dot_dimension_numbers<[1], [0], [0], [1], [0, 0, 1, 1], [], []>} : vector<2x32xf32>, vector<32x96xf32>, vector<2x96xf32> -> vector<2x96xf32>
    %141 = vector.extract_strided_slice %140 {offsets = [0, 0], sizes = [2, 32], strides = [1, 1]} : vector<2x96xf32> to vector<2x32xf32>
    %142 = arith.addf %137, %141 : vector<2x32xf32>
    %143 = arith.negf %142 : vector<2x32xf32>
    %144 = math.exp %143 : vector<2x32xf32>
    %cst_31 = arith.constant 1.000000e+00 : f32
    %145 = vector.broadcast %cst_31 : f32 to vector<2x32xf32>
    %146 = arith.addf %145, %144 : vector<2x32xf32>
    %147 = arith.divf %145, %146 : vector<2x32xf32>
    %148 = vector.extract_strided_slice %140 {offsets = [0, 32], sizes = [2, 32], strides = [1, 1]} : vector<2x96xf32> to vector<2x32xf32>
    %149 = arith.addf %138, %148 : vector<2x32xf32>
    %150 = arith.negf %149 : vector<2x32xf32>
    %151 = math.exp %150 : vector<2x32xf32>
    %cst_32 = arith.constant 1.000000e+00 : f32
    %152 = vector.broadcast %cst_32 : f32 to vector<2x32xf32>
    %153 = arith.addf %152, %151 : vector<2x32xf32>
    %154 = arith.divf %152, %153 : vector<2x32xf32>
    %155 = vector.extract_strided_slice %140 {offsets = [0, 64], sizes = [2, 32], strides = [1, 1]} : vector<2x96xf32> to vector<2x32xf32>
    %156 = arith.addf %155, %6 : vector<2x32xf32>
    %157 = arith.mulf %147, %156 : vector<2x32xf32>
    %158 = arith.addf %139, %157 : vector<2x32xf32>
    %159 = math.tanh %158 : vector<2x32xf32>
    %cst_33 = arith.constant 1.000000e+00 : f32
    %160 = vector.broadcast %cst_33 : f32 to vector<2x32xf32>
    %161 = arith.subf %160, %154 : vector<2x32xf32>
    %162 = arith.mulf %161, %159 : vector<2x32xf32>
    %163 = arith.mulf %154, %136 : vector<2x32xf32>
    %164 = arith.addf %162, %163 : vector<2x32xf32>
    %165 = vector.extract_strided_slice %20 {offsets = [10, 0], sizes = [2, 32], strides = [1, 1]} : vector<16x32xf32> to vector<2x32xf32>
    %166 = vector.extract_strided_slice %21 {offsets = [10, 0], sizes = [2, 32], strides = [1, 1]} : vector<16x32xf32> to vector<2x32xf32>
    %167 = vector.extract_strided_slice %22 {offsets = [10, 0], sizes = [2, 32], strides = [1, 1]} : vector<16x32xf32> to vector<2x32xf32>
    %cst_34 = arith.constant dense<0.000000e+00> : vector<2x96xf32>
    %168 = tpu.matmul %164, %23, %cst_34 {dimension_numbers = #tpu.dot_dimension_numbers<[1], [0], [0], [1], [0, 0, 1, 1], [], []>} : vector<2x32xf32>, vector<32x96xf32>, vector<2x96xf32> -> vector<2x96xf32>
    %169 = vector.extract_strided_slice %168 {offsets = [0, 0], sizes = [2, 32], strides = [1, 1]} : vector<2x96xf32> to vector<2x32xf32>
    %170 = arith.addf %165, %169 : vector<2x32xf32>
    %171 = arith.negf %170 : vector<2x32xf32>
    %172 = math.exp %171 : vector<2x32xf32>
    %cst_35 = arith.constant 1.000000e+00 : f32
    %173 = vector.broadcast %cst_35 : f32 to vector<2x32xf32>
    %174 = arith.addf %173, %172 : vector<2x32xf32>
    %175 = arith.divf %173, %174 : vector<2x32xf32>
    %176 = vector.extract_strided_slice %168 {offsets = [0, 32], sizes = [2, 32], strides = [1, 1]} : vector<2x96xf32> to vector<2x32xf32>
    %177 = arith.addf %166, %176 : vector<2x32xf32>
    %178 = arith.negf %177 : vector<2x32xf32>
    %179 = math.exp %178 : vector<2x32xf32>
    %cst_36 = arith.constant 1.000000e+00 : f32
    %180 = vector.broadcast %cst_36 : f32 to vector<2x32xf32>
    %181 = arith.addf %180, %179 : vector<2x32xf32>
    %182 = arith.divf %180, %181 : vector<2x32xf32>
    %183 = vector.extract_strided_slice %168 {offsets = [0, 64], sizes = [2, 32], strides = [1, 1]} : vector<2x96xf32> to vector<2x32xf32>
    %184 = arith.addf %183, %6 : vector<2x32xf32>
    %185 = arith.mulf %175, %184 : vector<2x32xf32>
    %186 = arith.addf %167, %185 : vector<2x32xf32>
    %187 = math.tanh %186 : vector<2x32xf32>
    %cst_37 = arith.constant 1.000000e+00 : f32
    %188 = vector.broadcast %cst_37 : f32 to vector<2x32xf32>
    %189 = arith.subf %188, %182 : vector<2x32xf32>
    %190 = arith.mulf %189, %187 : vector<2x32xf32>
    %191 = arith.mulf %182, %164 : vector<2x32xf32>
    %192 = arith.addf %190, %191 : vector<2x32xf32>
    %193 = vector.extract_strided_slice %20 {offsets = [12, 0], sizes = [2, 32], strides = [1, 1]} : vector<16x32xf32> to vector<2x32xf32>
    %194 = vector.extract_strided_slice %21 {offsets = [12, 0], sizes = [2, 32], strides = [1, 1]} : vector<16x32xf32> to vector<2x32xf32>
    %195 = vector.extract_strided_slice %22 {offsets = [12, 0], sizes = [2, 32], strides = [1, 1]} : vector<16x32xf32> to vector<2x32xf32>
    %cst_38 = arith.constant dense<0.000000e+00> : vector<2x96xf32>
    %196 = tpu.matmul %192, %23, %cst_38 {dimension_numbers = #tpu.dot_dimension_numbers<[1], [0], [0], [1], [0, 0, 1, 1], [], []>} : vector<2x32xf32>, vector<32x96xf32>, vector<2x96xf32> -> vector<2x96xf32>
    %197 = vector.extract_strided_slice %196 {offsets = [0, 0], sizes = [2, 32], strides = [1, 1]} : vector<2x96xf32> to vector<2x32xf32>
    %198 = arith.addf %193, %197 : vector<2x32xf32>
    %199 = arith.negf %198 : vector<2x32xf32>
    %200 = math.exp %199 : vector<2x32xf32>
    %cst_39 = arith.constant 1.000000e+00 : f32
    %201 = vector.broadcast %cst_39 : f32 to vector<2x32xf32>
    %202 = arith.addf %201, %200 : vector<2x32xf32>
    %203 = arith.divf %201, %202 : vector<2x32xf32>
    %204 = vector.extract_strided_slice %196 {offsets = [0, 32], sizes = [2, 32], strides = [1, 1]} : vector<2x96xf32> to vector<2x32xf32>
    %205 = arith.addf %194, %204 : vector<2x32xf32>
    %206 = arith.negf %205 : vector<2x32xf32>
    %207 = math.exp %206 : vector<2x32xf32>
    %cst_40 = arith.constant 1.000000e+00 : f32
    %208 = vector.broadcast %cst_40 : f32 to vector<2x32xf32>
    %209 = arith.addf %208, %207 : vector<2x32xf32>
    %210 = arith.divf %208, %209 : vector<2x32xf32>
    %211 = vector.extract_strided_slice %196 {offsets = [0, 64], sizes = [2, 32], strides = [1, 1]} : vector<2x96xf32> to vector<2x32xf32>
    %212 = arith.addf %211, %6 : vector<2x32xf32>
    %213 = arith.mulf %203, %212 : vector<2x32xf32>
    %214 = arith.addf %195, %213 : vector<2x32xf32>
    %215 = math.tanh %214 : vector<2x32xf32>
    %cst_41 = arith.constant 1.000000e+00 : f32
    %216 = vector.broadcast %cst_41 : f32 to vector<2x32xf32>
    %217 = arith.subf %216, %210 : vector<2x32xf32>
    %218 = arith.mulf %217, %215 : vector<2x32xf32>
    %219 = arith.mulf %210, %192 : vector<2x32xf32>
    %220 = arith.addf %218, %219 : vector<2x32xf32>
    %221 = vector.extract_strided_slice %20 {offsets = [14, 0], sizes = [2, 32], strides = [1, 1]} : vector<16x32xf32> to vector<2x32xf32>
    %222 = vector.extract_strided_slice %21 {offsets = [14, 0], sizes = [2, 32], strides = [1, 1]} : vector<16x32xf32> to vector<2x32xf32>
    %223 = vector.extract_strided_slice %22 {offsets = [14, 0], sizes = [2, 32], strides = [1, 1]} : vector<16x32xf32> to vector<2x32xf32>
    %cst_42 = arith.constant dense<0.000000e+00> : vector<2x96xf32>
    %224 = tpu.matmul %220, %23, %cst_42 {dimension_numbers = #tpu.dot_dimension_numbers<[1], [0], [0], [1], [0, 0, 1, 1], [], []>} : vector<2x32xf32>, vector<32x96xf32>, vector<2x96xf32> -> vector<2x96xf32>
    %225 = vector.extract_strided_slice %224 {offsets = [0, 0], sizes = [2, 32], strides = [1, 1]} : vector<2x96xf32> to vector<2x32xf32>
    %226 = arith.addf %221, %225 : vector<2x32xf32>
    %227 = arith.negf %226 : vector<2x32xf32>
    %228 = math.exp %227 : vector<2x32xf32>
    %cst_43 = arith.constant 1.000000e+00 : f32
    %229 = vector.broadcast %cst_43 : f32 to vector<2x32xf32>
    %230 = arith.addf %229, %228 : vector<2x32xf32>
    %231 = arith.divf %229, %230 : vector<2x32xf32>
    %232 = vector.extract_strided_slice %224 {offsets = [0, 32], sizes = [2, 32], strides = [1, 1]} : vector<2x96xf32> to vector<2x32xf32>
    %233 = arith.addf %222, %232 : vector<2x32xf32>
    %234 = arith.negf %233 : vector<2x32xf32>
    %235 = math.exp %234 : vector<2x32xf32>
    %cst_44 = arith.constant 1.000000e+00 : f32
    %236 = vector.broadcast %cst_44 : f32 to vector<2x32xf32>
    %237 = arith.addf %236, %235 : vector<2x32xf32>
    %238 = arith.divf %236, %237 : vector<2x32xf32>
    %239 = vector.extract_strided_slice %224 {offsets = [0, 64], sizes = [2, 32], strides = [1, 1]} : vector<2x96xf32> to vector<2x32xf32>
    %240 = arith.addf %239, %6 : vector<2x32xf32>
    %241 = arith.mulf %231, %240 : vector<2x32xf32>
    %242 = arith.addf %223, %241 : vector<2x32xf32>
    %243 = math.tanh %242 : vector<2x32xf32>
    %cst_45 = arith.constant 1.000000e+00 : f32
    %244 = vector.broadcast %cst_45 : f32 to vector<2x32xf32>
    %245 = arith.subf %244, %238 : vector<2x32xf32>
    %246 = arith.mulf %245, %243 : vector<2x32xf32>
    %247 = arith.mulf %238, %220 : vector<2x32xf32>
    %248 = arith.addf %246, %247 : vector<2x32xf32>
    %c144 = arith.constant 144 : index
    %c0_46 = arith.constant 0 : index
    %249 = vector.load %arg1[%c144, %c0_46] : memref<248x96xf32, #tpu.memory_space<vmem>>, vector<32x16xf32>
    %cst_47 = arith.constant dense<0.000000e+00> : vector<2x16xf32>
    %250 = tpu.matmul %248, %249, %cst_47 {dimension_numbers = #tpu.dot_dimension_numbers<[1], [0], [0], [1], [0, 0, 1, 1], [], []>} : vector<2x32xf32>, vector<32x16xf32>, vector<2x16xf32> -> vector<2x16xf32>
    %251 = vector.broadcast %13 : vector<1x16xf32> to vector<2x16xf32>
    %252 = arith.addf %250, %251 : vector<2x16xf32>
    %cst_48 = arith.constant 0.000000e+00 : f32
    %253 = vector.broadcast %cst_48 : f32 to vector<2x16xf32>
    %254 = arith.maximumf %252, %253 : vector<2x16xf32>
    %c40 = arith.constant 40 : index
    %c0_49 = arith.constant 0 : index
    %255 = vector.load %arg1[%c40, %c0_49] : memref<248x96xf32, #tpu.memory_space<vmem>>, vector<16x96xf32>
    %cst_50 = arith.constant dense<0.000000e+00> : vector<2x96xf32>
    %256 = tpu.matmul %254, %255, %cst_50 {dimension_numbers = #tpu.dot_dimension_numbers<[1], [0], [0], [1], [0, 0, 1, 1], [], []>} : vector<2x16xf32>, vector<16x96xf32>, vector<2x96xf32> -> vector<2x96xf32>
    %257 = vector.broadcast %2 : vector<1x96xf32> to vector<2x96xf32>
    %258 = arith.addf %256, %257 : vector<2x96xf32>
    %c88 = arith.constant 88 : index
    %c0_51 = arith.constant 0 : index
    %259 = vector.load %arg1[%c88, %c0_51] : memref<248x96xf32, #tpu.memory_space<vmem>>, vector<16x96xf32>
    %cst_52 = arith.constant dense<0.000000e+00> : vector<2x96xf32>
    %260 = tpu.matmul %254, %259, %cst_52 {dimension_numbers = #tpu.dot_dimension_numbers<[1], [0], [0], [1], [0, 0, 1, 1], [], []>} : vector<2x16xf32>, vector<16x96xf32>, vector<2x96xf32> -> vector<2x96xf32>
    %261 = vector.broadcast %3 : vector<1x96xf32> to vector<2x96xf32>
    %262 = arith.addf %260, %261 : vector<2x96xf32>
    %263 = vector.extract_strided_slice %258 {offsets = [0, 0], sizes = [2, 32], strides = [1, 1]} : vector<2x96xf32> to vector<2x32xf32>
    %264 = vector.extract_strided_slice %258 {offsets = [0, 32], sizes = [2, 32], strides = [1, 1]} : vector<2x96xf32> to vector<2x32xf32>
    %265 = vector.extract_strided_slice %258 {offsets = [0, 64], sizes = [2, 32], strides = [1, 1]} : vector<2x96xf32> to vector<2x32xf32>
    %266 = vector.extract_strided_slice %262 {offsets = [0, 0], sizes = [2, 32], strides = [1, 1]} : vector<2x96xf32> to vector<2x32xf32>
    %267 = vector.extract_strided_slice %262 {offsets = [0, 32], sizes = [2, 32], strides = [1, 1]} : vector<2x96xf32> to vector<2x32xf32>
    %268 = vector.extract_strided_slice %262 {offsets = [0, 64], sizes = [2, 32], strides = [1, 1]} : vector<2x96xf32> to vector<2x32xf32>
    %c56 = arith.constant 56 : index
    %c0_53 = arith.constant 0 : index
    %269 = vector.load %arg1[%c56, %c0_53] : memref<248x96xf32, #tpu.memory_space<vmem>>, vector<32x96xf32>
    %c104 = arith.constant 104 : index
    %c0_54 = arith.constant 0 : index
    %270 = vector.load %arg1[%c104, %c0_54] : memref<248x96xf32, #tpu.memory_space<vmem>>, vector<32x96xf32>
    %cst_55 = arith.constant dense<0.000000e+00> : vector<2x96xf32>
    %271 = tpu.matmul %248, %269, %cst_55 {dimension_numbers = #tpu.dot_dimension_numbers<[1], [0], [0], [1], [0, 0, 1, 1], [], []>} : vector<2x32xf32>, vector<32x96xf32>, vector<2x96xf32> -> vector<2x96xf32>
    %272 = vector.extract_strided_slice %271 {offsets = [0, 0], sizes = [2, 32], strides = [1, 1]} : vector<2x96xf32> to vector<2x32xf32>
    %273 = arith.addf %263, %272 : vector<2x32xf32>
    %274 = arith.negf %273 : vector<2x32xf32>
    %275 = math.exp %274 : vector<2x32xf32>
    %cst_56 = arith.constant 1.000000e+00 : f32
    %276 = vector.broadcast %cst_56 : f32 to vector<2x32xf32>
    %277 = arith.addf %276, %275 : vector<2x32xf32>
    %278 = arith.divf %276, %277 : vector<2x32xf32>
    %279 = vector.extract_strided_slice %271 {offsets = [0, 32], sizes = [2, 32], strides = [1, 1]} : vector<2x96xf32> to vector<2x32xf32>
    %280 = arith.addf %264, %279 : vector<2x32xf32>
    %281 = arith.negf %280 : vector<2x32xf32>
    %282 = math.exp %281 : vector<2x32xf32>
    %cst_57 = arith.constant 1.000000e+00 : f32
    %283 = vector.broadcast %cst_57 : f32 to vector<2x32xf32>
    %284 = arith.addf %283, %282 : vector<2x32xf32>
    %285 = arith.divf %283, %284 : vector<2x32xf32>
    %286 = vector.extract_strided_slice %271 {offsets = [0, 64], sizes = [2, 32], strides = [1, 1]} : vector<2x96xf32> to vector<2x32xf32>
    %287 = arith.addf %286, %9 : vector<2x32xf32>
    %288 = arith.mulf %278, %287 : vector<2x32xf32>
    %289 = arith.addf %265, %288 : vector<2x32xf32>
    %290 = math.tanh %289 : vector<2x32xf32>
    %cst_58 = arith.constant 1.000000e+00 : f32
    %291 = vector.broadcast %cst_58 : f32 to vector<2x32xf32>
    %292 = arith.subf %291, %285 : vector<2x32xf32>
    %293 = arith.mulf %292, %290 : vector<2x32xf32>
    %294 = arith.mulf %285, %248 : vector<2x32xf32>
    %295 = arith.addf %293, %294 : vector<2x32xf32>
    %cst_59 = arith.constant dense<0.000000e+00> : vector<2x96xf32>
    %296 = tpu.matmul %248, %270, %cst_59 {dimension_numbers = #tpu.dot_dimension_numbers<[1], [0], [0], [1], [0, 0, 1, 1], [], []>} : vector<2x32xf32>, vector<32x96xf32>, vector<2x96xf32> -> vector<2x96xf32>
    %297 = vector.extract_strided_slice %296 {offsets = [0, 0], sizes = [2, 32], strides = [1, 1]} : vector<2x96xf32> to vector<2x32xf32>
    %298 = arith.addf %266, %297 : vector<2x32xf32>
    %299 = arith.negf %298 : vector<2x32xf32>
    %300 = math.exp %299 : vector<2x32xf32>
    %cst_60 = arith.constant 1.000000e+00 : f32
    %301 = vector.broadcast %cst_60 : f32 to vector<2x32xf32>
    %302 = arith.addf %301, %300 : vector<2x32xf32>
    %303 = arith.divf %301, %302 : vector<2x32xf32>
    %304 = vector.extract_strided_slice %296 {offsets = [0, 32], sizes = [2, 32], strides = [1, 1]} : vector<2x96xf32> to vector<2x32xf32>
    %305 = arith.addf %267, %304 : vector<2x32xf32>
    %306 = arith.negf %305 : vector<2x32xf32>
    %307 = math.exp %306 : vector<2x32xf32>
    %cst_61 = arith.constant 1.000000e+00 : f32
    %308 = vector.broadcast %cst_61 : f32 to vector<2x32xf32>
    %309 = arith.addf %308, %307 : vector<2x32xf32>
    %310 = arith.divf %308, %309 : vector<2x32xf32>
    %311 = vector.extract_strided_slice %296 {offsets = [0, 64], sizes = [2, 32], strides = [1, 1]} : vector<2x96xf32> to vector<2x32xf32>
    %312 = arith.addf %311, %12 : vector<2x32xf32>
    %313 = arith.mulf %303, %312 : vector<2x32xf32>
    %314 = arith.addf %268, %313 : vector<2x32xf32>
    %315 = math.tanh %314 : vector<2x32xf32>
    %cst_62 = arith.constant 1.000000e+00 : f32
    %316 = vector.broadcast %cst_62 : f32 to vector<2x32xf32>
    %317 = arith.subf %316, %310 : vector<2x32xf32>
    %318 = arith.mulf %317, %315 : vector<2x32xf32>
    %319 = arith.mulf %310, %248 : vector<2x32xf32>
    %320 = arith.addf %318, %319 : vector<2x32xf32>
    %cst_63 = arith.constant dense<0.000000e+00> : vector<2x96xf32>
    %321 = tpu.matmul %295, %269, %cst_63 {dimension_numbers = #tpu.dot_dimension_numbers<[1], [0], [0], [1], [0, 0, 1, 1], [], []>} : vector<2x32xf32>, vector<32x96xf32>, vector<2x96xf32> -> vector<2x96xf32>
    %322 = vector.extract_strided_slice %321 {offsets = [0, 0], sizes = [2, 32], strides = [1, 1]} : vector<2x96xf32> to vector<2x32xf32>
    %323 = arith.addf %263, %322 : vector<2x32xf32>
    %324 = arith.negf %323 : vector<2x32xf32>
    %325 = math.exp %324 : vector<2x32xf32>
    %cst_64 = arith.constant 1.000000e+00 : f32
    %326 = vector.broadcast %cst_64 : f32 to vector<2x32xf32>
    %327 = arith.addf %326, %325 : vector<2x32xf32>
    %328 = arith.divf %326, %327 : vector<2x32xf32>
    %329 = vector.extract_strided_slice %321 {offsets = [0, 32], sizes = [2, 32], strides = [1, 1]} : vector<2x96xf32> to vector<2x32xf32>
    %330 = arith.addf %264, %329 : vector<2x32xf32>
    %331 = arith.negf %330 : vector<2x32xf32>
    %332 = math.exp %331 : vector<2x32xf32>
    %cst_65 = arith.constant 1.000000e+00 : f32
    %333 = vector.broadcast %cst_65 : f32 to vector<2x32xf32>
    %334 = arith.addf %333, %332 : vector<2x32xf32>
    %335 = arith.divf %333, %334 : vector<2x32xf32>
    %336 = vector.extract_strided_slice %321 {offsets = [0, 64], sizes = [2, 32], strides = [1, 1]} : vector<2x96xf32> to vector<2x32xf32>
    %337 = arith.addf %336, %9 : vector<2x32xf32>
    %338 = arith.mulf %328, %337 : vector<2x32xf32>
    %339 = arith.addf %265, %338 : vector<2x32xf32>
    %340 = math.tanh %339 : vector<2x32xf32>
    %cst_66 = arith.constant 1.000000e+00 : f32
    %341 = vector.broadcast %cst_66 : f32 to vector<2x32xf32>
    %342 = arith.subf %341, %335 : vector<2x32xf32>
    %343 = arith.mulf %342, %340 : vector<2x32xf32>
    %344 = arith.mulf %335, %295 : vector<2x32xf32>
    %345 = arith.addf %343, %344 : vector<2x32xf32>
    %cst_67 = arith.constant dense<0.000000e+00> : vector<2x96xf32>
    %346 = tpu.matmul %320, %270, %cst_67 {dimension_numbers = #tpu.dot_dimension_numbers<[1], [0], [0], [1], [0, 0, 1, 1], [], []>} : vector<2x32xf32>, vector<32x96xf32>, vector<2x96xf32> -> vector<2x96xf32>
    %347 = vector.extract_strided_slice %346 {offsets = [0, 0], sizes = [2, 32], strides = [1, 1]} : vector<2x96xf32> to vector<2x32xf32>
    %348 = arith.addf %266, %347 : vector<2x32xf32>
    %349 = arith.negf %348 : vector<2x32xf32>
    %350 = math.exp %349 : vector<2x32xf32>
    %cst_68 = arith.constant 1.000000e+00 : f32
    %351 = vector.broadcast %cst_68 : f32 to vector<2x32xf32>
    %352 = arith.addf %351, %350 : vector<2x32xf32>
    %353 = arith.divf %351, %352 : vector<2x32xf32>
    %354 = vector.extract_strided_slice %346 {offsets = [0, 32], sizes = [2, 32], strides = [1, 1]} : vector<2x96xf32> to vector<2x32xf32>
    %355 = arith.addf %267, %354 : vector<2x32xf32>
    %356 = arith.negf %355 : vector<2x32xf32>
    %357 = math.exp %356 : vector<2x32xf32>
    %cst_69 = arith.constant 1.000000e+00 : f32
    %358 = vector.broadcast %cst_69 : f32 to vector<2x32xf32>
    %359 = arith.addf %358, %357 : vector<2x32xf32>
    %360 = arith.divf %358, %359 : vector<2x32xf32>
    %361 = vector.extract_strided_slice %346 {offsets = [0, 64], sizes = [2, 32], strides = [1, 1]} : vector<2x96xf32> to vector<2x32xf32>
    %362 = arith.addf %361, %12 : vector<2x32xf32>
    %363 = arith.mulf %353, %362 : vector<2x32xf32>
    %364 = arith.addf %268, %363 : vector<2x32xf32>
    %365 = math.tanh %364 : vector<2x32xf32>
    %cst_70 = arith.constant 1.000000e+00 : f32
    %366 = vector.broadcast %cst_70 : f32 to vector<2x32xf32>
    %367 = arith.subf %366, %360 : vector<2x32xf32>
    %368 = arith.mulf %367, %365 : vector<2x32xf32>
    %369 = arith.mulf %360, %320 : vector<2x32xf32>
    %370 = arith.addf %368, %369 : vector<2x32xf32>
    %cst_71 = arith.constant dense<0.000000e+00> : vector<2x96xf32>
    %371 = tpu.matmul %345, %269, %cst_71 {dimension_numbers = #tpu.dot_dimension_numbers<[1], [0], [0], [1], [0, 0, 1, 1], [], []>} : vector<2x32xf32>, vector<32x96xf32>, vector<2x96xf32> -> vector<2x96xf32>
    %372 = vector.extract_strided_slice %371 {offsets = [0, 0], sizes = [2, 32], strides = [1, 1]} : vector<2x96xf32> to vector<2x32xf32>
    %373 = arith.addf %263, %372 : vector<2x32xf32>
    %374 = arith.negf %373 : vector<2x32xf32>
    %375 = math.exp %374 : vector<2x32xf32>
    %cst_72 = arith.constant 1.000000e+00 : f32
    %376 = vector.broadcast %cst_72 : f32 to vector<2x32xf32>
    %377 = arith.addf %376, %375 : vector<2x32xf32>
    %378 = arith.divf %376, %377 : vector<2x32xf32>
    %379 = vector.extract_strided_slice %371 {offsets = [0, 32], sizes = [2, 32], strides = [1, 1]} : vector<2x96xf32> to vector<2x32xf32>
    %380 = arith.addf %264, %379 : vector<2x32xf32>
    %381 = arith.negf %380 : vector<2x32xf32>
    %382 = math.exp %381 : vector<2x32xf32>
    %cst_73 = arith.constant 1.000000e+00 : f32
    %383 = vector.broadcast %cst_73 : f32 to vector<2x32xf32>
    %384 = arith.addf %383, %382 : vector<2x32xf32>
    %385 = arith.divf %383, %384 : vector<2x32xf32>
    %386 = vector.extract_strided_slice %371 {offsets = [0, 64], sizes = [2, 32], strides = [1, 1]} : vector<2x96xf32> to vector<2x32xf32>
    %387 = arith.addf %386, %9 : vector<2x32xf32>
    %388 = arith.mulf %378, %387 : vector<2x32xf32>
    %389 = arith.addf %265, %388 : vector<2x32xf32>
    %390 = math.tanh %389 : vector<2x32xf32>
    %cst_74 = arith.constant 1.000000e+00 : f32
    %391 = vector.broadcast %cst_74 : f32 to vector<2x32xf32>
    %392 = arith.subf %391, %385 : vector<2x32xf32>
    %393 = arith.mulf %392, %390 : vector<2x32xf32>
    %394 = arith.mulf %385, %345 : vector<2x32xf32>
    %395 = arith.addf %393, %394 : vector<2x32xf32>
    %cst_75 = arith.constant dense<0.000000e+00> : vector<2x96xf32>
    %396 = tpu.matmul %370, %270, %cst_75 {dimension_numbers = #tpu.dot_dimension_numbers<[1], [0], [0], [1], [0, 0, 1, 1], [], []>} : vector<2x32xf32>, vector<32x96xf32>, vector<2x96xf32> -> vector<2x96xf32>
    %397 = vector.extract_strided_slice %396 {offsets = [0, 0], sizes = [2, 32], strides = [1, 1]} : vector<2x96xf32> to vector<2x32xf32>
    %398 = arith.addf %266, %397 : vector<2x32xf32>
    %399 = arith.negf %398 : vector<2x32xf32>
    %400 = math.exp %399 : vector<2x32xf32>
    %cst_76 = arith.constant 1.000000e+00 : f32
    %401 = vector.broadcast %cst_76 : f32 to vector<2x32xf32>
    %402 = arith.addf %401, %400 : vector<2x32xf32>
    %403 = arith.divf %401, %402 : vector<2x32xf32>
    %404 = vector.extract_strided_slice %396 {offsets = [0, 32], sizes = [2, 32], strides = [1, 1]} : vector<2x96xf32> to vector<2x32xf32>
    %405 = arith.addf %267, %404 : vector<2x32xf32>
    %406 = arith.negf %405 : vector<2x32xf32>
    %407 = math.exp %406 : vector<2x32xf32>
    %cst_77 = arith.constant 1.000000e+00 : f32
    %408 = vector.broadcast %cst_77 : f32 to vector<2x32xf32>
    %409 = arith.addf %408, %407 : vector<2x32xf32>
    %410 = arith.divf %408, %409 : vector<2x32xf32>
    %411 = vector.extract_strided_slice %396 {offsets = [0, 64], sizes = [2, 32], strides = [1, 1]} : vector<2x96xf32> to vector<2x32xf32>
    %412 = arith.addf %411, %12 : vector<2x32xf32>
    %413 = arith.mulf %403, %412 : vector<2x32xf32>
    %414 = arith.addf %268, %413 : vector<2x32xf32>
    %415 = math.tanh %414 : vector<2x32xf32>
    %cst_78 = arith.constant 1.000000e+00 : f32
    %416 = vector.broadcast %cst_78 : f32 to vector<2x32xf32>
    %417 = arith.subf %416, %410 : vector<2x32xf32>
    %418 = arith.mulf %417, %415 : vector<2x32xf32>
    %419 = arith.mulf %410, %370 : vector<2x32xf32>
    %420 = arith.addf %418, %419 : vector<2x32xf32>
    %cst_79 = arith.constant dense<0.000000e+00> : vector<2x96xf32>
    %421 = tpu.matmul %395, %269, %cst_79 {dimension_numbers = #tpu.dot_dimension_numbers<[1], [0], [0], [1], [0, 0, 1, 1], [], []>} : vector<2x32xf32>, vector<32x96xf32>, vector<2x96xf32> -> vector<2x96xf32>
    %422 = vector.extract_strided_slice %421 {offsets = [0, 0], sizes = [2, 32], strides = [1, 1]} : vector<2x96xf32> to vector<2x32xf32>
    %423 = arith.addf %263, %422 : vector<2x32xf32>
    %424 = arith.negf %423 : vector<2x32xf32>
    %425 = math.exp %424 : vector<2x32xf32>
    %cst_80 = arith.constant 1.000000e+00 : f32
    %426 = vector.broadcast %cst_80 : f32 to vector<2x32xf32>
    %427 = arith.addf %426, %425 : vector<2x32xf32>
    %428 = arith.divf %426, %427 : vector<2x32xf32>
    %429 = vector.extract_strided_slice %421 {offsets = [0, 32], sizes = [2, 32], strides = [1, 1]} : vector<2x96xf32> to vector<2x32xf32>
    %430 = arith.addf %264, %429 : vector<2x32xf32>
    %431 = arith.negf %430 : vector<2x32xf32>
    %432 = math.exp %431 : vector<2x32xf32>
    %cst_81 = arith.constant 1.000000e+00 : f32
    %433 = vector.broadcast %cst_81 : f32 to vector<2x32xf32>
    %434 = arith.addf %433, %432 : vector<2x32xf32>
    %435 = arith.divf %433, %434 : vector<2x32xf32>
    %436 = vector.extract_strided_slice %421 {offsets = [0, 64], sizes = [2, 32], strides = [1, 1]} : vector<2x96xf32> to vector<2x32xf32>
    %437 = arith.addf %436, %9 : vector<2x32xf32>
    %438 = arith.mulf %428, %437 : vector<2x32xf32>
    %439 = arith.addf %265, %438 : vector<2x32xf32>
    %440 = math.tanh %439 : vector<2x32xf32>
    %cst_82 = arith.constant 1.000000e+00 : f32
    %441 = vector.broadcast %cst_82 : f32 to vector<2x32xf32>
    %442 = arith.subf %441, %435 : vector<2x32xf32>
    %443 = arith.mulf %442, %440 : vector<2x32xf32>
    %444 = arith.mulf %435, %395 : vector<2x32xf32>
    %445 = arith.addf %443, %444 : vector<2x32xf32>
    %cst_83 = arith.constant dense<0.000000e+00> : vector<2x96xf32>
    %446 = tpu.matmul %420, %270, %cst_83 {dimension_numbers = #tpu.dot_dimension_numbers<[1], [0], [0], [1], [0, 0, 1, 1], [], []>} : vector<2x32xf32>, vector<32x96xf32>, vector<2x96xf32> -> vector<2x96xf32>
    %447 = vector.extract_strided_slice %446 {offsets = [0, 0], sizes = [2, 32], strides = [1, 1]} : vector<2x96xf32> to vector<2x32xf32>
    %448 = arith.addf %266, %447 : vector<2x32xf32>
    %449 = arith.negf %448 : vector<2x32xf32>
    %450 = math.exp %449 : vector<2x32xf32>
    %cst_84 = arith.constant 1.000000e+00 : f32
    %451 = vector.broadcast %cst_84 : f32 to vector<2x32xf32>
    %452 = arith.addf %451, %450 : vector<2x32xf32>
    %453 = arith.divf %451, %452 : vector<2x32xf32>
    %454 = vector.extract_strided_slice %446 {offsets = [0, 32], sizes = [2, 32], strides = [1, 1]} : vector<2x96xf32> to vector<2x32xf32>
    %455 = arith.addf %267, %454 : vector<2x32xf32>
    %456 = arith.negf %455 : vector<2x32xf32>
    %457 = math.exp %456 : vector<2x32xf32>
    %cst_85 = arith.constant 1.000000e+00 : f32
    %458 = vector.broadcast %cst_85 : f32 to vector<2x32xf32>
    %459 = arith.addf %458, %457 : vector<2x32xf32>
    %460 = arith.divf %458, %459 : vector<2x32xf32>
    %461 = vector.extract_strided_slice %446 {offsets = [0, 64], sizes = [2, 32], strides = [1, 1]} : vector<2x96xf32> to vector<2x32xf32>
    %462 = arith.addf %461, %12 : vector<2x32xf32>
    %463 = arith.mulf %453, %462 : vector<2x32xf32>
    %464 = arith.addf %268, %463 : vector<2x32xf32>
    %465 = math.tanh %464 : vector<2x32xf32>
    %cst_86 = arith.constant 1.000000e+00 : f32
    %466 = vector.broadcast %cst_86 : f32 to vector<2x32xf32>
    %467 = arith.subf %466, %460 : vector<2x32xf32>
    %468 = arith.mulf %467, %465 : vector<2x32xf32>
    %469 = arith.mulf %460, %420 : vector<2x32xf32>
    %470 = arith.addf %468, %469 : vector<2x32xf32>
    %cst_87 = arith.constant dense<0.000000e+00> : vector<2x96xf32>
    %471 = tpu.matmul %445, %269, %cst_87 {dimension_numbers = #tpu.dot_dimension_numbers<[1], [0], [0], [1], [0, 0, 1, 1], [], []>} : vector<2x32xf32>, vector<32x96xf32>, vector<2x96xf32> -> vector<2x96xf32>
    %472 = vector.extract_strided_slice %471 {offsets = [0, 0], sizes = [2, 32], strides = [1, 1]} : vector<2x96xf32> to vector<2x32xf32>
    %473 = arith.addf %263, %472 : vector<2x32xf32>
    %474 = arith.negf %473 : vector<2x32xf32>
    %475 = math.exp %474 : vector<2x32xf32>
    %cst_88 = arith.constant 1.000000e+00 : f32
    %476 = vector.broadcast %cst_88 : f32 to vector<2x32xf32>
    %477 = arith.addf %476, %475 : vector<2x32xf32>
    %478 = arith.divf %476, %477 : vector<2x32xf32>
    %479 = vector.extract_strided_slice %471 {offsets = [0, 32], sizes = [2, 32], strides = [1, 1]} : vector<2x96xf32> to vector<2x32xf32>
    %480 = arith.addf %264, %479 : vector<2x32xf32>
    %481 = arith.negf %480 : vector<2x32xf32>
    %482 = math.exp %481 : vector<2x32xf32>
    %cst_89 = arith.constant 1.000000e+00 : f32
    %483 = vector.broadcast %cst_89 : f32 to vector<2x32xf32>
    %484 = arith.addf %483, %482 : vector<2x32xf32>
    %485 = arith.divf %483, %484 : vector<2x32xf32>
    %486 = vector.extract_strided_slice %471 {offsets = [0, 64], sizes = [2, 32], strides = [1, 1]} : vector<2x96xf32> to vector<2x32xf32>
    %487 = arith.addf %486, %9 : vector<2x32xf32>
    %488 = arith.mulf %478, %487 : vector<2x32xf32>
    %489 = arith.addf %265, %488 : vector<2x32xf32>
    %490 = math.tanh %489 : vector<2x32xf32>
    %cst_90 = arith.constant 1.000000e+00 : f32
    %491 = vector.broadcast %cst_90 : f32 to vector<2x32xf32>
    %492 = arith.subf %491, %485 : vector<2x32xf32>
    %493 = arith.mulf %492, %490 : vector<2x32xf32>
    %494 = arith.mulf %485, %445 : vector<2x32xf32>
    %495 = arith.addf %493, %494 : vector<2x32xf32>
    %cst_91 = arith.constant dense<0.000000e+00> : vector<2x96xf32>
    %496 = tpu.matmul %470, %270, %cst_91 {dimension_numbers = #tpu.dot_dimension_numbers<[1], [0], [0], [1], [0, 0, 1, 1], [], []>} : vector<2x32xf32>, vector<32x96xf32>, vector<2x96xf32> -> vector<2x96xf32>
    %497 = vector.extract_strided_slice %496 {offsets = [0, 0], sizes = [2, 32], strides = [1, 1]} : vector<2x96xf32> to vector<2x32xf32>
    %498 = arith.addf %266, %497 : vector<2x32xf32>
    %499 = arith.negf %498 : vector<2x32xf32>
    %500 = math.exp %499 : vector<2x32xf32>
    %cst_92 = arith.constant 1.000000e+00 : f32
    %501 = vector.broadcast %cst_92 : f32 to vector<2x32xf32>
    %502 = arith.addf %501, %500 : vector<2x32xf32>
    %503 = arith.divf %501, %502 : vector<2x32xf32>
    %504 = vector.extract_strided_slice %496 {offsets = [0, 32], sizes = [2, 32], strides = [1, 1]} : vector<2x96xf32> to vector<2x32xf32>
    %505 = arith.addf %267, %504 : vector<2x32xf32>
    %506 = arith.negf %505 : vector<2x32xf32>
    %507 = math.exp %506 : vector<2x32xf32>
    %cst_93 = arith.constant 1.000000e+00 : f32
    %508 = vector.broadcast %cst_93 : f32 to vector<2x32xf32>
    %509 = arith.addf %508, %507 : vector<2x32xf32>
    %510 = arith.divf %508, %509 : vector<2x32xf32>
    %511 = vector.extract_strided_slice %496 {offsets = [0, 64], sizes = [2, 32], strides = [1, 1]} : vector<2x96xf32> to vector<2x32xf32>
    %512 = arith.addf %511, %12 : vector<2x32xf32>
    %513 = arith.mulf %503, %512 : vector<2x32xf32>
    %514 = arith.addf %268, %513 : vector<2x32xf32>
    %515 = math.tanh %514 : vector<2x32xf32>
    %cst_94 = arith.constant 1.000000e+00 : f32
    %516 = vector.broadcast %cst_94 : f32 to vector<2x32xf32>
    %517 = arith.subf %516, %510 : vector<2x32xf32>
    %518 = arith.mulf %517, %515 : vector<2x32xf32>
    %519 = arith.mulf %510, %470 : vector<2x32xf32>
    %520 = arith.addf %518, %519 : vector<2x32xf32>
    %cst_95 = arith.constant dense<0.000000e+00> : vector<2x96xf32>
    %521 = tpu.matmul %495, %269, %cst_95 {dimension_numbers = #tpu.dot_dimension_numbers<[1], [0], [0], [1], [0, 0, 1, 1], [], []>} : vector<2x32xf32>, vector<32x96xf32>, vector<2x96xf32> -> vector<2x96xf32>
    %522 = vector.extract_strided_slice %521 {offsets = [0, 0], sizes = [2, 32], strides = [1, 1]} : vector<2x96xf32> to vector<2x32xf32>
    %523 = arith.addf %263, %522 : vector<2x32xf32>
    %524 = arith.negf %523 : vector<2x32xf32>
    %525 = math.exp %524 : vector<2x32xf32>
    %cst_96 = arith.constant 1.000000e+00 : f32
    %526 = vector.broadcast %cst_96 : f32 to vector<2x32xf32>
    %527 = arith.addf %526, %525 : vector<2x32xf32>
    %528 = arith.divf %526, %527 : vector<2x32xf32>
    %529 = vector.extract_strided_slice %521 {offsets = [0, 32], sizes = [2, 32], strides = [1, 1]} : vector<2x96xf32> to vector<2x32xf32>
    %530 = arith.addf %264, %529 : vector<2x32xf32>
    %531 = arith.negf %530 : vector<2x32xf32>
    %532 = math.exp %531 : vector<2x32xf32>
    %cst_97 = arith.constant 1.000000e+00 : f32
    %533 = vector.broadcast %cst_97 : f32 to vector<2x32xf32>
    %534 = arith.addf %533, %532 : vector<2x32xf32>
    %535 = arith.divf %533, %534 : vector<2x32xf32>
    %536 = vector.extract_strided_slice %521 {offsets = [0, 64], sizes = [2, 32], strides = [1, 1]} : vector<2x96xf32> to vector<2x32xf32>
    %537 = arith.addf %536, %9 : vector<2x32xf32>
    %538 = arith.mulf %528, %537 : vector<2x32xf32>
    %539 = arith.addf %265, %538 : vector<2x32xf32>
    %540 = math.tanh %539 : vector<2x32xf32>
    %cst_98 = arith.constant 1.000000e+00 : f32
    %541 = vector.broadcast %cst_98 : f32 to vector<2x32xf32>
    %542 = arith.subf %541, %535 : vector<2x32xf32>
    %543 = arith.mulf %542, %540 : vector<2x32xf32>
    %544 = arith.mulf %535, %495 : vector<2x32xf32>
    %545 = arith.addf %543, %544 : vector<2x32xf32>
    %cst_99 = arith.constant dense<0.000000e+00> : vector<2x96xf32>
    %546 = tpu.matmul %545, %269, %cst_99 {dimension_numbers = #tpu.dot_dimension_numbers<[1], [0], [0], [1], [0, 0, 1, 1], [], []>} : vector<2x32xf32>, vector<32x96xf32>, vector<2x96xf32> -> vector<2x96xf32>
    %547 = vector.extract_strided_slice %546 {offsets = [0, 0], sizes = [2, 32], strides = [1, 1]} : vector<2x96xf32> to vector<2x32xf32>
    %548 = arith.addf %263, %547 : vector<2x32xf32>
    %549 = arith.negf %548 : vector<2x32xf32>
    %550 = math.exp %549 : vector<2x32xf32>
    %cst_100 = arith.constant 1.000000e+00 : f32
    %551 = vector.broadcast %cst_100 : f32 to vector<2x32xf32>
    %552 = arith.addf %551, %550 : vector<2x32xf32>
    %553 = arith.divf %551, %552 : vector<2x32xf32>
    %554 = vector.extract_strided_slice %546 {offsets = [0, 32], sizes = [2, 32], strides = [1, 1]} : vector<2x96xf32> to vector<2x32xf32>
    %555 = arith.addf %264, %554 : vector<2x32xf32>
    %556 = arith.negf %555 : vector<2x32xf32>
    %557 = math.exp %556 : vector<2x32xf32>
    %cst_101 = arith.constant 1.000000e+00 : f32
    %558 = vector.broadcast %cst_101 : f32 to vector<2x32xf32>
    %559 = arith.addf %558, %557 : vector<2x32xf32>
    %560 = arith.divf %558, %559 : vector<2x32xf32>
    %561 = vector.extract_strided_slice %546 {offsets = [0, 64], sizes = [2, 32], strides = [1, 1]} : vector<2x96xf32> to vector<2x32xf32>
    %562 = arith.addf %561, %9 : vector<2x32xf32>
    %563 = arith.mulf %553, %562 : vector<2x32xf32>
    %564 = arith.addf %265, %563 : vector<2x32xf32>
    %565 = math.tanh %564 : vector<2x32xf32>
    %cst_102 = arith.constant 1.000000e+00 : f32
    %566 = vector.broadcast %cst_102 : f32 to vector<2x32xf32>
    %567 = arith.subf %566, %560 : vector<2x32xf32>
    %568 = arith.mulf %567, %565 : vector<2x32xf32>
    %569 = arith.mulf %560, %545 : vector<2x32xf32>
    %570 = arith.addf %568, %569 : vector<2x32xf32>
    %cst_103 = arith.constant dense<0.000000e+00> : vector<2x96xf32>
    %571 = tpu.matmul %570, %269, %cst_103 {dimension_numbers = #tpu.dot_dimension_numbers<[1], [0], [0], [1], [0, 0, 1, 1], [], []>} : vector<2x32xf32>, vector<32x96xf32>, vector<2x96xf32> -> vector<2x96xf32>
    %572 = vector.extract_strided_slice %571 {offsets = [0, 0], sizes = [2, 32], strides = [1, 1]} : vector<2x96xf32> to vector<2x32xf32>
    %573 = arith.addf %263, %572 : vector<2x32xf32>
    %574 = arith.negf %573 : vector<2x32xf32>
    %575 = math.exp %574 : vector<2x32xf32>
    %cst_104 = arith.constant 1.000000e+00 : f32
    %576 = vector.broadcast %cst_104 : f32 to vector<2x32xf32>
    %577 = arith.addf %576, %575 : vector<2x32xf32>
    %578 = arith.divf %576, %577 : vector<2x32xf32>
    %579 = vector.extract_strided_slice %571 {offsets = [0, 32], sizes = [2, 32], strides = [1, 1]} : vector<2x96xf32> to vector<2x32xf32>
    %580 = arith.addf %264, %579 : vector<2x32xf32>
    %581 = arith.negf %580 : vector<2x32xf32>
    %582 = math.exp %581 : vector<2x32xf32>
    %cst_105 = arith.constant 1.000000e+00 : f32
    %583 = vector.broadcast %cst_105 : f32 to vector<2x32xf32>
    %584 = arith.addf %583, %582 : vector<2x32xf32>
    %585 = arith.divf %583, %584 : vector<2x32xf32>
    %586 = vector.extract_strided_slice %571 {offsets = [0, 64], sizes = [2, 32], strides = [1, 1]} : vector<2x96xf32> to vector<2x32xf32>
    %587 = arith.addf %586, %9 : vector<2x32xf32>
    %588 = arith.mulf %578, %587 : vector<2x32xf32>
    %589 = arith.addf %265, %588 : vector<2x32xf32>
    %590 = math.tanh %589 : vector<2x32xf32>
    %cst_106 = arith.constant 1.000000e+00 : f32
    %591 = vector.broadcast %cst_106 : f32 to vector<2x32xf32>
    %592 = arith.subf %591, %585 : vector<2x32xf32>
    %593 = arith.mulf %592, %590 : vector<2x32xf32>
    %594 = arith.mulf %585, %570 : vector<2x32xf32>
    %595 = arith.addf %593, %594 : vector<2x32xf32>
    %596 = tpu.concatenate %295, %345, %395, %445, %495, %545, %570, %595 in 0 : vector<2x32xf32>, vector<2x32xf32>, vector<2x32xf32>, vector<2x32xf32>, vector<2x32xf32>, vector<2x32xf32>, vector<2x32xf32>, vector<2x32xf32> -> vector<16x32xf32>
    %597 = tpu.concatenate %320, %370, %420, %470, %520 in 0 : vector<2x32xf32>, vector<2x32xf32>, vector<2x32xf32>, vector<2x32xf32>, vector<2x32xf32> -> vector<10x32xf32>
    %c176 = arith.constant 176 : index
    %c0_107 = arith.constant 0 : index
    %598 = vector.load %arg1[%c176, %c0_107] : memref<248x96xf32, #tpu.memory_space<vmem>>, vector<32x4xf32>
    %cst_108 = arith.constant dense<0.000000e+00> : vector<16x4xf32>
    %599 = tpu.matmul %596, %598, %cst_108 {dimension_numbers = #tpu.dot_dimension_numbers<[1], [0], [0], [1], [0, 0, 1, 1], [], []>} : vector<16x32xf32>, vector<32x4xf32>, vector<16x4xf32> -> vector<16x4xf32>
    %600 = vector.broadcast %14 : vector<1x4xf32> to vector<16x4xf32>
    %601 = arith.addf %599, %600 : vector<16x4xf32>
    %cst_109 = arith.constant 0.000000e+00 : f32
    %602 = vector.broadcast %cst_109 : f32 to vector<10x32xf32>
    %603 = arith.maximumf %597, %602 : vector<10x32xf32>
    %c208 = arith.constant 208 : index
    %c0_110 = arith.constant 0 : index
    %604 = vector.load %arg1[%c208, %c0_110] : memref<248x96xf32, #tpu.memory_space<vmem>>, vector<32x4xf32>
    %cst_111 = arith.constant dense<0.000000e+00> : vector<10x4xf32>
    %605 = tpu.matmul %603, %604, %cst_111 {dimension_numbers = #tpu.dot_dimension_numbers<[1], [0], [0], [1], [0, 0, 1, 1], [], []>} : vector<10x32xf32>, vector<32x4xf32>, vector<10x4xf32> -> vector<10x4xf32>
    %606 = vector.broadcast %15 : vector<1x4xf32> to vector<10x4xf32>
    %607 = arith.addf %605, %606 : vector<10x4xf32>
    %608 = vector.extract_strided_slice %0 {offsets = [14, 0], sizes = [2, 4], strides = [1, 1]} : vector<16x4xf32> to vector<2x4xf32>
    %609 = vector.extract_strided_slice %607 {offsets = [0, 0], sizes = [2, 4], strides = [1, 1]} : vector<10x4xf32> to vector<2x4xf32>
    %610 = arith.addf %608, %609 : vector<2x4xf32>
    %611 = vector.extract_strided_slice %607 {offsets = [2, 0], sizes = [2, 4], strides = [1, 1]} : vector<10x4xf32> to vector<2x4xf32>
    %612 = arith.addf %610, %611 : vector<2x4xf32>
    %613 = vector.extract_strided_slice %607 {offsets = [4, 0], sizes = [2, 4], strides = [1, 1]} : vector<10x4xf32> to vector<2x4xf32>
    %614 = arith.addf %612, %613 : vector<2x4xf32>
    %615 = vector.extract_strided_slice %607 {offsets = [6, 0], sizes = [2, 4], strides = [1, 1]} : vector<10x4xf32> to vector<2x4xf32>
    %616 = arith.addf %614, %615 : vector<2x4xf32>
    %617 = vector.extract_strided_slice %607 {offsets = [8, 0], sizes = [2, 4], strides = [1, 1]} : vector<10x4xf32> to vector<2x4xf32>
    %618 = arith.addf %616, %617 : vector<2x4xf32>
    %619 = tpu.concatenate %610, %612, %614, %616, %618 in 0 : vector<2x4xf32>, vector<2x4xf32>, vector<2x4xf32>, vector<2x4xf32>, vector<2x4xf32> -> vector<10x4xf32>
    %620 = tpu.concatenate %601, %619 in 0 : vector<16x4xf32>, vector<10x4xf32> -> vector<26x4xf32>
    %c0_112 = arith.constant 0 : index
    %c0_113 = arith.constant 0 : index
    %621 = vector.load %arg2[%c0_112, %c0_113] : memref<26x4xf32, #tpu.memory_space<vmem>>, vector<26x4xf32>
    tpu.vector_store %arg2[%c0_112, %c0_113], %620 {strides = array<i32>} : memref<26x4xf32, #tpu.memory_space<vmem>>, vector<26x4xf32>,
    return
  }
}

</mosaic_0001>

<bundles_post_ra>
// kernel: forecast_rnn.1
= control target key start
LH: loop header
LB: loop body
LE: loop exit
PB: predicated region body
PF: predicated region fallthrough
CT: control target
= control target key end

     0   :  { %vm34_vm0 = vcmask 1043456   ;;  %vm27_vm1 = vcmask 31744   ;;  %s1901_s23 = smov 64   ;;  %v1902_v7 = vmov 0.0   ;;  %s1903_s26 = smov 96   ;;  %vm65_vm6 = vcmask 261120   ;;  %s2375_s1 = inlined_call_operand.vmem [shape: f32[248,96], index: 1, kind: input, shape index: {}]   ;;  %s2376_s0 = inlined_call_operand.vmem [shape: f32[16,4], index: 0, kind: input, shape index: {}]   ;;  %s2377_s2 = inlined_call_operand.vmem [shape: f32[26,4], index: 2, kind: output, shape index: {}]  }
   0x1   :  { %v64_v0 = vld [vmem:[%s2375_s1 + $0x20] sm:$0xff]  ;;  %v63_v1 = vld [vmem:[%s2375_s1 + $0x18] sm:$0xff]  ;;  %v62_v3 = vld [vmem:[%s2375_s1 + $0x10] sm:$0xff] }
   0x2   :  { %v25_v2 = vld [vmem:[%s2375_s1] sm:$0xf]  ;;  %81 = vmatpush.msra.mxu1 %v64_v0  ;;  %v1765_v5 = vld [vmem:[%s2375_s1 + $0x8b] ss:$0 sm:$0xff]  ;;  %222 = vmatpush.msra.mxu3 %v64_v0  ;;  %v1950_v11 = vld [vmem:[%s2375_s1 + $0x88] ss:$0 sm:$0xff] }
   0x3   :  { %1711 = vmatpush.msk.msra.mxu0 %vm34_vm0, %v25_v2  ;;  %v11_v4 = vld [vmem:[%s2376_s0] sm:$0xff]  ;;  %v61_v6 = vld [vmem:[%s2375_s1 + $0x8] sm:$0xff]  ;;  %110 = vrot.lane.b32.xlu0 %v1765_v5, %s1901_s23 }
   0x4   :  { %1712 = vmatmul.msk.f32.vlgmr.msra.gmra.mxu0 %vm27_vm1, %v11_v4  ;;  %82 = vmatpush.msra.mxu1 %v63_v1  ;;  %v12_v33 = vld [vmem:[%s2376_s0 + $0x8] sm:$0xff] }
   0x5   :  { %150 = vmatpush.msrb.mxu0 %v64_v0  ;;  %223 = vmatpush.msra.mxu3 %v63_v1 }
   0x6   :  { %83 = vmatpush.msra.mxu1 %v62_v3  ;;  %366 = vmatpush.msra.mxu2 %v64_v0 }
   0x7   :  { %151 = vmatpush.msrb.mxu0 %v63_v1  ;;  %224 = vmatpush.msra.mxu3 %v62_v3 }
   0x8   :  { %84 = vmatpush.msra.mxu1 %v61_v6  ;;  %367 = vmatpush.msra.mxu2 %v63_v1 }
   0x9   :  { %152 = vmatpush.msrb.mxu0 %v62_v3  ;;  %85 = vmatmul.f32.vlgmr.msra.gmra.mxu1 %v1902_v7 }
   0xa   :  { %225 = vmatpush.msra.mxu3 %v61_v6  ;;  %294 = vmatpush.msrb.mxu1 %v64_v0 }
   0xb   :  { %153 = vmatpush.msrb.mxu0 %v61_v6  ;;  %368 = vmatpush.msra.mxu2 %v62_v3 }
   0xc   :  { %432 = vmatpush.msrb.mxu3 %v64_v0  ;;  %295 = vmatpush.msrb.mxu1 %v63_v1 }
   0xd   :  { %504 = vmatpush.msra.mxu0 %v64_v0  ;;  %369 = vmatpush.msra.mxu2 %v61_v6 }
   0xe   :  { %433 = vmatpush.msrb.mxu3 %v63_v1  ;;  %296 = vmatpush.msrb.mxu1 %v62_v3 }
   0xf   :  { %505 = vmatpush.msra.mxu0 %v63_v1 }
  0x10   :  { %434 = vmatpush.msrb.mxu3 %v62_v3  ;;  %297 = vmatpush.msrb.mxu1 %v61_v6 }
  0x11   :  { %506 = vmatpush.msra.mxu0 %v62_v3 }
  0x12   :  { %435 = vmatpush.msrb.mxu3 %v61_v6  ;;  %576 = vmatpush.msra.mxu1 %v64_v0 }
  0x13   :  { %507 = vmatpush.msra.mxu0 %v61_v6 }
  0x14   :  { %577 = vmatpush.msra.mxu1 %v63_v1  ;;  %1713 = vmatmul.msk.f32.gmra.mxu0 %vm27_vm1, %v12_v33 }
  0x16   :  { %578 = vmatpush.msra.mxu1 %v62_v3 }
  0x18   :  { %579 = vmatpush.msra.mxu1 %v61_v6 }
  0x75   :  { %v1943_v8 = vpop.permute.xlu0 %110 }
  0x81   :  { %v55_v12 = vpop.f32.mrf.mxu0 }
  0x82   :  { %v1953_v13 = vadd.f32 %v1950_v11, %v55_v12 }
  0x86   :  { %v86_v9 = vpop.f32.mrf.mxu1 }
  0x87   :  { %v113_v10 = vadd.f32 %v1943_v8, %v86_v9  ;;  %v89_v14 = vadd.f32 %v86_v9, %v1953_v13 }
  0x89   :  { %115 = vrot.lane.b32.xlu0 %v113_v10, %s1901_s23  ;;  %v1714_v15 = vmul.f32 -1.442695, %v89_v14 }
  0x8b   :  { %1774 = vpow2.f32 %v1714_v15 }
  0x91   :  { %v1775_v16 = vpop.eup %1774  ;;  %v1965_v40 = vpop.f32.mrf.mxu0 }
  0x92   :  { %v93_v17 = vadd.f32 1.0, %v1775_v16 }
  0x94   :  { %1776 = vrcp.f32 %v93_v17  ;;  %v105_v23 = vand.u32 2147483648, %v93_v17  ;;  %vm99_vm3 = vweird.f32 %v93_v17  ;;  %v103_v24 = vand.u32 2147483647, %v93_v17 }
  0x96   :  { %v106_v26 = vor.u32 1.1754944e-38, %v105_v23  ;;  %vm104_vm5 = vcmp.eq.f32.partialorder %v103_v24, 8.507059e+37 }
  0x9a   :  { %v1777_v18 = vpop.eup %1776 }
  0x9b   :  { %v95_v19 = vmul.f32 %v1777_v18, %v93_v17  ;;  %vm100_vm2 = vweird.f32 %v1777_v18 }
  0x9c   :  { %vm101_vm4 = vmor %vm99_vm3, %vm100_vm2 }
  0x9d   :  { %v96_v20 = vsub.f32 1.0, %v95_v19 }
  0x9f   :  { %v97_v21 = vmul.f32 %v1777_v18, %v96_v20 }
  0xa1   :  { %v98_v22 = vadd.f32 %v1777_v18, %v97_v21 }
  0xa3   :  { %v102_v25 = vsel %vm101_vm4, %v1777_v18, %v98_v22 }
  0xa4   :  { %v107_v28 = vsel %vm104_vm5, %v106_v26, %v102_v25 }
  0xa5   :  { %v125_v34 = vsub.f32 1.0, %v107_v28  ;;  %v131_v37 = vmul.f32 0.0, %v107_v28 }
  0xfb   :  { %v116_v27 = vpop.permute.xlu0 %115 }
  0xfc   :  { %v118_v29 = vmul.f32 %v116_v27, %v107_v28 }
  0xfe   :  { %120 = vrot.lane.b32.xlu1 %v118_v29, %s1901_s23 }
 0x170   :  { %v121_v30 = vpop.permute.xlu1 %120 }
 0x171   :  { %v123_v31 = vadd.f32 %v121_v30, %v1953_v13 }
 0x173   :  { %1778 = vtanh.f32 %v123_v31 }
 0x179   :  { %v1779_v32 = vpop.eup %1778 }
 0x17a   :  { %127 = vrot.lane.b32.xlu1 %v1779_v32, %s1903_s26 }
 0x1ec   :  { %v128_v35 = vpop.permute.xlu1 %127 }
 0x1ed   :  { %v130_v36 = vmul.f32 %v128_v35, %v125_v34 }
 0x1ef   :  { %v132_v38 = vadd.f32 %v131_v37, %v130_v36 }
 0x1f1   :  { %134 = vrot.lane.b32.xlu2 %v132_v38, %s1903_s26  ;;  %v200_v57 = vrot.slane %v132_v38, 6 }
 0x24b   :  { %v135_v39 = vpop.permute.xlu2 %134 }
 0x24c   :  { %1715 = vmatmul.msk.f32.vlgmr.msrb.gmra.mxu0 %vm65_vm6, %v135_v39 }
 0x2c9   :  { %v155_v41 = vpop.f32.mrf.mxu0 }
 0x2ca   :  { %v159_v42 = vrot.slane %v155_v41, 6  ;;  %v181_v43 = vadd.f32 %v155_v41, %v1943_v8 }
 0x2cc   :  { %v161_v44 = vadd.f32 %v159_v42, %v1953_v13  ;;  %v183_v45 = vrot.slane %v181_v43, 6 }
 0x2ce   :  { %v1716_v46 = vmul.f32 -1.442695, %v161_v44  ;;  %184 = vrot.lane.b32.xlu2 %v183_v45, %s1901_s23 }
 0x2d0   :  { %1780 = vpow2.f32 %v1716_v46 }
 0x2d6   :  { %v1781_v47 = vpop.eup %1780 }
 0x2d7   :  { %v165_v48 = vadd.f32 1.0, %v1781_v47 }
 0x2d9   :  { %1782 = vrcp.f32 %v165_v48  ;;  %v177_v52 = vand.u32 2147483648, %v165_v48  ;;  %v175_v54 = vand.u32 2147483647, %v165_v48  ;;  %vm171_vm8 = vweird.f32 %v165_v48 }
 0x2db   :  { %v178_v56 = vor.u32 1.1754944e-38, %v177_v52  ;;  %vm176_vm10 = vcmp.eq.f32.partialorder %v175_v54, 8.507059e+37 }
 0x2df   :  { %v1783_v49 = vpop.eup %1782 }
 0x2e0   :  { %v167_v50 = vmul.f32 %v1783_v49, %v165_v48  ;;  %vm172_vm7 = vweird.f32 %v1783_v49 }
 0x2e1   :  { %vm173_vm9 = vmor %vm171_vm8, %vm172_vm7 }
 0x2e2   :  { %v168_v51 = vsub.f32 1.0, %v167_v50 }
 0x2e4   :  { %v169_v53 = vmul.f32 %v1783_v49, %v168_v51 }
 0x2e6   :  { %v170_v55 = vadd.f32 %v1783_v49, %v169_v53 }
 0x2e8   :  { %v174_v58 = vsel %vm173_vm9, %v1783_v49, %v170_v55 }
 0x2e9   :  { %v179_v59 = vsel %vm176_vm10, %v178_v56, %v174_v58 }
 0x2ea   :  { %v202_v60 = vmul.f32 %v200_v57, %v179_v59  ;;  %v194_v2 = vsub.f32 1.0, %v179_v59 }
 0x328   :  { %v185_v61 = vpop.permute.xlu2 %184 }
 0x329   :  { %v187_v62 = vmul.f32 %v185_v61, %v179_v59 }
 0x32b   :  { %189 = vrot.lane.b32.xlu0 %v187_v62, %s1901_s23 }
 0x39d   :  { %v190_v63 = vpop.permute.xlu0 %189 }
 0x39e   :  { %v192_v0 = vadd.f32 %v190_v63, %v1953_v13 }
 0x3a0   :  { %1784 = vtanh.f32 %v192_v0 }
 0x3a6   :  { %v1785_v1 = vpop.eup %1784 }
 0x3a7   :  { %196 = vrot.lane.b32.xlu1 %v1785_v1, %s1903_s26 }
 0x419   :  { %v197_v3 = vpop.permute.xlu1 %196 }
 0x41a   :  { %v199_v4 = vmul.f32 %v197_v3, %v194_v2 }
 0x41c   :  { %v203_v5 = vadd.f32 %v202_v60, %v199_v4 }
 0x41e   :  { %v205_v6 = vrot.slane %v203_v5, 2  ;;  %v272_v34 = vrot.slane %v203_v5, 6 }
 0x420   :  { %206 = vrot.lane.b32.xlu2 %v205_v6, %s1903_s26 }
 0x47a   :  { %v207_v7 = vpop.permute.xlu2 %206 }
 0x47b   :  { %1717 = vmatmul.msk.f32.vlgmr.msra.gmra.mxu3 %vm65_vm6, %v207_v7 }
 0x4fe   :  { %v227_v9 = vpop.f32.mrf.mxu3 }
 0x4ff   :  { %v253_v10 = vadd.f32 %v227_v9, %v1943_v8  ;;  %v231_v14 = vrot.slane %v227_v9, 4 }
 0x501   :  { %v255_v12 = vrot.slane %v253_v10, 4  ;;  %v233_v15 = vadd.f32 %v231_v14, %v1953_v13 }
 0x503   :  { %256 = vrot.lane.b32.xlu0 %v255_v12, %s1901_s23  ;;  %v1718_v16 = vmul.f32 -1.442695, %v233_v15 }
 0x505   :  { %1786 = vpow2.f32 %v1718_v16 }
 0x50b   :  { %v1787_v17 = vpop.eup %1786 }
 0x50c   :  { %v237_v18 = vadd.f32 1.0, %v1787_v17 }
 0x50e   :  { %1788 = vrcp.f32 %v237_v18  ;;  %v249_v24 = vand.u32 2147483648, %v237_v18  ;;  %vm243_vm12 = vweird.f32 %v237_v18  ;;  %v247_v25 = vand.u32 2147483647, %v237_v18 }
 0x510   :  { %v250_v27 = vor.u32 1.1754944e-38, %v249_v24  ;;  %vm248_vm14 = vcmp.eq.f32.partialorder %v247_v25, 8.507059e+37 }
 0x514   :  { %v1789_v19 = vpop.eup %1788 }
 0x515   :  { %v239_v20 = vmul.f32 %v1789_v19, %v237_v18  ;;  %vm244_vm11 = vweird.f32 %v1789_v19 }
 0x516   :  { %vm245_vm13 = vmor %vm243_vm12, %vm244_vm11 }
 0x517   :  { %v240_v21 = vsub.f32 1.0, %v239_v20 }
 0x519   :  { %v241_v22 = vmul.f32 %v1789_v19, %v240_v21 }
 0x51b   :  { %v242_v23 = vadd.f32 %v1789_v19, %v241_v22 }
 0x51d   :  { %v246_v26 = vsel %vm245_vm13, %v1789_v19, %v242_v23 }
 0x51e   :  { %v251_v29 = vsel %vm248_vm14, %v250_v27, %v246_v26 }
 0x51f   :  { %v266_v35 = vsub.f32 1.0, %v251_v29  ;;  %v274_v37 = vmul.f32 %v272_v34, %v251_v29 }
 0x575   :  { %v257_v28 = vpop.permute.xlu0 %256 }
 0x576   :  { %v259_v30 = vmul.f32 %v257_v28, %v251_v29 }
 0x578   :  { %261 = vrot.lane.b32.xlu1 %v259_v30, %s1901_s23 }
 0x5ea   :  { %v262_v31 = vpop.permute.xlu1 %261 }
 0x5eb   :  { %v264_v32 = vadd.f32 %v262_v31, %v1953_v13 }
 0x5ed   :  { %1790 = vtanh.f32 %v264_v32 }
 0x5f3   :  { %v1791_v33 = vpop.eup %1790 }
 0x5f4   :  { %268 = vrot.lane.b32.xlu2 %v1791_v33, %s1903_s26 }
 0x64e   :  { %v269_v36 = vpop.permute.xlu2 %268 }
 0x64f   :  { %v271_v38 = vmul.f32 %v269_v36, %v266_v35 }
 0x651   :  { %v275_v39 = vadd.f32 %v274_v37, %v271_v38 }
 0x653   :  { %v277_v41 = vrot.slane %v275_v39, 4  ;;  %v344_v2 = vrot.slane %v275_v39, 6 }
 0x655   :  { %278 = vrot.lane.b32.xlu0 %v277_v41, %s1903_s26 }
 0x6c7   :  { %v279_v42 = vpop.permute.xlu0 %278 }
 0x6c8   :  { %1719 = vmatmul.msk.f32.vlgmr.msrb.gmra.mxu1 %vm65_vm6, %v279_v42 }
 0x745   :  { %v299_v43 = vpop.f32.mrf.mxu1 }
 0x746   :  { %v325_v44 = vadd.f32 %v299_v43, %v1943_v8  ;;  %v303_v46 = vrot.slane %v299_v43, 2 }
 0x748   :  { %v327_v45 = vrot.slane %v325_v44, 2  ;;  %v305_v47 = vadd.f32 %v303_v46, %v1953_v13 }
 0x74a   :  { %328 = vrot.lane.b32.xlu1 %v327_v45, %s1901_s23  ;;  %v1720_v48 = vmul.f32 -1.442695, %v305_v47 }
 0x74c   :  { %1792 = vpow2.f32 %v1720_v48 }
 0x752   :  { %v1793_v49 = vpop.eup %1792 }
 0x753   :  { %v309_v50 = vadd.f32 1.0, %v1793_v49 }
 0x755   :  { %1794 = vrcp.f32 %v309_v50  ;;  %v321_v56 = vand.u32 2147483648, %v309_v50  ;;  %vm315_vm2 = vweird.f32 %v309_v50  ;;  %v319_v57 = vand.u32 2147483647, %v309_v50 }
 0x757   :  { %v322_v59 = vor.u32 1.1754944e-38, %v321_v56  ;;  %vm320_vm4 = vcmp.eq.f32.partialorder %v319_v57, 8.507059e+37 }
 0x75b   :  { %v1795_v51 = vpop.eup %1794 }
 0x75c   :  { %v311_v52 = vmul.f32 %v1795_v51, %v309_v50  ;;  %vm316_vm15 = vweird.f32 %v1795_v51 }
 0x75d   :  { %vm317_vm3 = vmor %vm315_vm2, %vm316_vm15 }
 0x75e   :  { %v312_v53 = vsub.f32 1.0, %v311_v52 }
 0x760   :  { %v313_v54 = vmul.f32 %v1795_v51, %v312_v53 }
 0x762   :  { %v314_v55 = vadd.f32 %v1795_v51, %v313_v54 }
 0x764   :  { %v318_v58 = vsel %vm317_vm3, %v1795_v51, %v314_v55 }
 0x765   :  { %v323_v61 = vsel %vm320_vm4, %v322_v59, %v318_v58 }
 0x766   :  { %v338_v3 = vsub.f32 1.0, %v323_v61  ;;  %v346_v5 = vmul.f32 %v344_v2, %v323_v61 }
 0x7bc   :  { %v329_v60 = vpop.permute.xlu1 %328 }
 0x7bd   :  { %v331_v62 = vmul.f32 %v329_v60, %v323_v61 }
 0x7bf   :  { %333 = vrot.lane.b32.xlu2 %v331_v62, %s1901_s23 }
 0x819   :  { %v334_v63 = vpop.permute.xlu2 %333 }
 0x81a   :  { %v336_v0 = vadd.f32 %v334_v63, %v1953_v13  ;;  %v1995_v13 = vadd.f32 %v1950_v11, %v1965_v40 }
 0x81c   :  { %1796 = vtanh.f32 %v336_v0 }
 0x822   :  { %v1797_v1 = vpop.eup %1796 }
 0x823   :  { %340 = vrot.lane.b32.xlu0 %v1797_v1, %s1903_s26 }
 0x895   :  { %v341_v4 = vpop.permute.xlu0 %340 }
 0x896   :  { %v343_v6 = vmul.f32 %v341_v4, %v338_v3 }
 0x898   :  { %v347_v7 = vadd.f32 %v346_v5, %v343_v6 }
 0x89a   :  { %v349_v9 = vrot.slane %v347_v7, 6 }
 0x89c   :  { %350 = vrot.lane.b32.xlu1 %v349_v9, %s1903_s26 }
 0x90e   :  { %v351_v10 = vpop.permute.xlu1 %350 }
 0x90f   :  { %1721 = vmatmul.msk.f32.vlgmr.msra.gmra.mxu2 %vm65_vm6, %v351_v10 }
 0x992   :  { %v371_v12 = vpop.f32.mrf.mxu2 }
 0x993   :  { %v394_v14 = vadd.f32 %v371_v12, %v1943_v8  ;;  %v374_v15 = vadd.f32 %v371_v12, %v1995_v13 }
 0x995   :  { %396 = vrot.lane.b32.xlu2 %v394_v14, %s1901_s23  ;;  %v1722_v16 = vmul.f32 -1.442695, %v374_v15 }
 0x997   :  { %1798 = vpow2.f32 %v1722_v16 }
 0x99d   :  { %v1799_v17 = vpop.eup %1798 }
 0x99e   :  { %v378_v18 = vadd.f32 1.0, %v1799_v17 }
 0x9a0   :  { %1800 = vrcp.f32 %v378_v18  ;;  %v390_v24 = vand.u32 2147483648, %v378_v18  ;;  %vm384_vm7 = vweird.f32 %v378_v18  ;;  %v388_v25 = vand.u32 2147483647, %v378_v18 }
 0x9a2   :  { %v391_v11 = vor.u32 1.1754944e-38, %v390_v24  ;;  %vm389_vm9 = vcmp.eq.f32.partialorder %v388_v25, 8.507059e+37 }
 0x9a6   :  { %v1801_v19 = vpop.eup %1800 }
 0x9a7   :  { %v380_v20 = vmul.f32 %v1801_v19, %v378_v18  ;;  %vm385_vm5 = vweird.f32 %v1801_v19 }
 0x9a8   :  { %vm386_vm8 = vmor %vm384_vm7, %vm385_vm5 }
 0x9a9   :  { %v381_v21 = vsub.f32 1.0, %v380_v20 }
 0x9ab   :  { %v382_v22 = vmul.f32 %v1801_v19, %v381_v21 }
 0x9ad   :  { %v383_v23 = vadd.f32 %v1801_v19, %v382_v22 }
 0x9af   :  { %v387_v26 = vsel %vm386_vm8, %v1801_v19, %v383_v23 }
 0x9b0   :  { %v392_v27 = vsel %vm389_vm9, %v391_v11, %v387_v26  ;;  %vm665_vm9 = vcmask 130048  }
 0x9b1   :  { %v406_v32 = vsub.f32 1.0, %v392_v27  ;;  %v413_v34 = vmul.f32 %v392_v27, %v349_v9 }
 0x9ef   :  { %v397_v40 = vpop.permute.xlu2 %396 }
 0x9f0   :  { %v399_v28 = vmul.f32 %v397_v40, %v392_v27 }
 0x9f2   :  { %401 = vrot.lane.b32.xlu0 %v399_v28, %s1901_s23 }
 0xa64   :  { %v402_v29 = vpop.permute.xlu0 %401 }
 0xa65   :  { %v404_v30 = vadd.f32 %v402_v29, %v1995_v13 }
 0xa67   :  { %1802 = vtanh.f32 %v404_v30 }
 0xa6d   :  { %v1803_v31 = vpop.eup %1802 }
 0xa6e   :  { %408 = vrot.lane.b32.xlu1 %v1803_v31, %s1903_s26 }
 0xae0   :  { %v409_v33 = vpop.permute.xlu1 %408 }
 0xae1   :  { %v411_v35 = vmul.f32 %v409_v33, %v406_v32 }
 0xae3   :  { %v414_v36 = vadd.f32 %v413_v34, %v411_v35 }
 0xae5   :  { %416 = vrot.lane.b32.xlu2 %v414_v36, %s1903_s26  ;;  %v482_v62 = vrot.slane %v414_v36, 6 }
 0xb3f   :  { %v417_v37 = vpop.permute.xlu2 %416 }
 0xb40   :  { %1723 = vmatmul.msk.f32.vlgmr.msrb.gmra.mxu3 %vm65_vm6, %v417_v37 }
 0xbc3   :  { %v437_v38 = vpop.f32.mrf.mxu3 }
 0xbc4   :  { %v463_v39 = vadd.f32 %v437_v38, %v1943_v8  ;;  %v441_v42 = vrot.slane %v437_v38, 6 }
 0xbc6   :  { %v465_v41 = vrot.slane %v463_v39, 6  ;;  %v443_v43 = vadd.f32 %v441_v42, %v1995_v13 }
 0xbc8   :  { %466 = vrot.lane.b32.xlu0 %v465_v41, %s1901_s23  ;;  %v1724_v44 = vmul.f32 -1.442695, %v443_v43 }
 0xbca   :  { %1804 = vpow2.f32 %v1724_v44 }
 0xbd0   :  { %v1805_v45 = vpop.eup %1804 }
 0xbd1   :  { %v447_v46 = vadd.f32 1.0, %v1805_v45 }
 0xbd3   :  { %1806 = vrcp.f32 %v447_v46  ;;  %v459_v52 = vand.u32 2147483648, %v447_v46  ;;  %vm453_vm11 = vweird.f32 %v447_v46  ;;  %v457_v53 = vand.u32 2147483647, %v447_v46 }
 0xbd5   :  { %v460_v55 = vor.u32 1.1754944e-38, %v459_v52  ;;  %vm458_vm13 = vcmp.eq.f32.partialorder %v457_v53, 8.507059e+37 }
 0xbd9   :  { %v1807_v47 = vpop.eup %1806 }
 0xbda   :  { %v449_v48 = vmul.f32 %v1807_v47, %v447_v46  ;;  %vm454_vm10 = vweird.f32 %v1807_v47 }
 0xbdb   :  { %vm455_vm12 = vmor %vm453_vm11, %vm454_vm10 }
 0xbdc   :  { %v450_v49 = vsub.f32 1.0, %v449_v48 }
 0xbde   :  { %v451_v50 = vmul.f32 %v1807_v47, %v450_v49 }
 0xbe0   :  { %v452_v51 = vadd.f32 %v1807_v47, %v451_v50 }
 0xbe2   :  { %v456_v54 = vsel %vm455_vm12, %v1807_v47, %v452_v51 }
 0xbe3   :  { %v461_v57 = vsel %vm458_vm13, %v460_v55, %v456_v54 }
 0xbe4   :  { %v476_v63 = vsub.f32 1.0, %v461_v57  ;;  %v484_v2 = vmul.f32 %v482_v62, %v461_v57 }
 0xc3a   :  { %v467_v56 = vpop.permute.xlu0 %466 }
 0xc3b   :  { %v469_v58 = vmul.f32 %v467_v56, %v461_v57 }
 0xc3d   :  { %471 = vrot.lane.b32.xlu1 %v469_v58, %s1901_s23 }
 0xcaf   :  { %v472_v59 = vpop.permute.xlu1 %471 }
 0xcb0   :  { %v474_v60 = vadd.f32 %v472_v59, %v1995_v13 }
 0xcb2   :  { %1808 = vtanh.f32 %v474_v60 }
 0xcb8   :  { %v1809_v61 = vpop.eup %1808 }
 0xcb9   :  { %478 = vrot.lane.b32.xlu2 %v1809_v61, %s1903_s26 }
 0xd13   :  { %v479_v0 = vpop.permute.xlu2 %478 }
 0xd14   :  { %v481_v1 = vmul.f32 %v479_v0, %v476_v63  ;;  %v633_v63 = vld [vmem:[%s2375_s1 + $0xa8] sm:$0xff]  ;;  %v2031_v0 = vld [vmem:[%s2375_s1 + $0x50] sm:$0xff] }
 0xd15   :  { %653 = vmatpush.msrb.mxu2 %v633_v63  ;;  %732 = vmatpush.msrb.mxu1 %v2031_v0 }
 0xd16   :  { %v485_v3 = vadd.f32 %v484_v2, %v481_v1  ;;  %v632_v1 = vld [vmem:[%s2375_s1 + $0xa0] sm:$0xff]  ;;  %v631_v2 = vld [vmem:[%s2375_s1 + $0x98] sm:$0xff] }
 0xd17   :  { %654 = vmatpush.msrb.mxu2 %v632_v1 }
 0xd18   :  { %v487_v4 = vrot.slane %v485_v3, 2  ;;  %v554_v30 = vrot.slane %v485_v3, 6  ;;  %v2048_v3 = vld [vmem:[%s2375_s1 + $0x40] sm:$0xff] }
 0xd19   :  { %655 = vmatpush.msrb.mxu2 %v631_v2 }
 0xd1a   :  { %488 = vrot.lane.b32.xlu0 %v487_v4, %s1903_s26  ;;  %v630_v4 = vld [vmem:[%s2375_s1 + $0x90] sm:$0xff] }
 0xd1b   :  { %656 = vmatpush.msrb.mxu2 %v630_v4 }
 0xd8c   :  { %v489_v5 = vpop.permute.xlu0 %488 }
 0xd8d   :  { %1725 = vmatmul.msk.f32.vlgmr.msra.gmra.mxu0 %vm65_vm6, %v489_v5  ;;  %v2057_v5 = vld [vmem:[%s2375_s1 + $0x38] sm:$0xff] }
 0xe0a   :  { %v509_v6 = vpop.f32.mrf.mxu0 }
 0xe0b   :  { %v535_v7 = vadd.f32 %v509_v6, %v1943_v8  ;;  %v513_v10 = vrot.slane %v509_v6, 4 }
 0xe0d   :  { %v537_v9 = vrot.slane %v535_v7, 4  ;;  %v515_v12 = vadd.f32 %v513_v10, %v1995_v13 }
 0xe0f   :  { %538 = vrot.lane.b32.xlu1 %v537_v9, %s1901_s23  ;;  %v1726_v14 = vmul.f32 -1.442695, %v515_v12 }
 0xe11   :  { %1810 = vpow2.f32 %v1726_v14  ;;  %v719_v14 = vld [vmem:[%s2375_s1 + $0x80] sm:$0xff] }
 0xe12   :  { %797 = vmatpush.msra.mxu2 %v719_v14 }
 0xe17   :  { %v1811_v15 = vpop.eup %1810 }
 0xe18   :  { %v519_v16 = vadd.f32 1.0, %v1811_v15  ;;  %v718_v15 = vld [vmem:[%s2375_s1 + $0x78] sm:$0xff] }
 0xe19   :  { %798 = vmatpush.msra.mxu2 %v718_v15 }
 0xe1a   :  { %1812 = vrcp.f32 %v519_v16  ;;  %v531_v22 = vand.u32 2147483648, %v519_v16  ;;  %vm525_vm15 = vweird.f32 %v519_v16  ;;  %v529_v23 = vand.u32 2147483647, %v519_v16 }
 0xe1c   :  { %v532_v25 = vor.u32 1.1754944e-38, %v531_v22  ;;  %vm530_vm3 = vcmp.eq.f32.partialorder %v529_v23, 8.507059e+37  ;;  %v662_v22 = vld [vmem:[%s2375_s1 + $0x28] sm:$0xff]  ;;  %v689_v23 = vld [vmem:[%s2375_s1 + $0x58] sm:$0xff] }
 0xe20   :  { %v1813_v17 = vpop.eup %1812 }
 0xe21   :  { %v521_v18 = vmul.f32 %v1813_v17, %v519_v16  ;;  %vm526_vm14 = vweird.f32 %v1813_v17  ;;  %v717_v16 = vld [vmem:[%s2375_s1 + $0x70] sm:$0xff] }
 0xe22   :  { %vm527_vm2 = vmor %vm525_vm15, %vm526_vm14  ;;  %799 = vmatpush.msra.mxu2 %v717_v16 }
 0xe23   :  { %v522_v19 = vsub.f32 1.0, %v521_v18  ;;  %v1767_v18 = vld [vmem:[%s2375_s1 + $0x8c] ss:$0 sm:$0xff] }
 0xe25   :  { %v523_v20 = vmul.f32 %v1813_v17, %v522_v19 }
 0xe27   :  { %v524_v21 = vadd.f32 %v1813_v17, %v523_v20  ;;  %v663_v20 = vld [vmem:[%s2375_s1 + $0x30] sm:$0xff] }
 0xe28   :  { %683 = vmatpush.msra.mxu3 %v663_v20 }
 0xe29   :  { %v528_v24 = vsel %vm527_vm2, %v1813_v17, %v524_v21  ;;  %v716_v17 = vld [vmem:[%s2375_s1 + $0x68] sm:$0xff]  ;;  %v690_v21 = vld [vmem:[%s2375_s1 + $0x60] sm:$0xff] }
 0xe2a   :  { %v533_v11 = vsel %vm530_vm3, %v532_v25, %v528_v24  ;;  %800 = vmatpush.msra.mxu2 %v716_v17  ;;  %706 = vmatpush.msrb.mxu0 %v690_v21 }
 0xe2b   :  { %v548_v31 = vsub.f32 1.0, %v533_v11  ;;  %v556_v33 = vmul.f32 %v554_v30, %v533_v11  ;;  %684 = vmatpush.msra.mxu3 %v662_v22 }
 0xe2c   :  { %707 = vmatpush.msrb.mxu0 %v689_v23 }
 0xe2d   :  { %866 = vmatpush.msrb.mxu3 %v2031_v0 }
 0xe2e   :  { %931 = vmatpush.msra.mxu0 %v719_v14 }
 0xe30   :  { %932 = vmatpush.msra.mxu0 %v718_v15 }
 0xe32   :  { %933 = vmatpush.msra.mxu0 %v717_v16 }
 0xe34   :  { %934 = vmatpush.msra.mxu0 %v716_v17 }
 0xe81   :  { %v539_v26 = vpop.permute.xlu1 %538 }
 0xe82   :  { %v541_v40 = vmul.f32 %v539_v26, %v533_v11  ;;  %v1768_v11 = vld [vmem:[%s2375_s1 + $0xf0] ss:$0 sm:$0xff] }
 0xe84   :  { %543 = vrot.lane.b32.xlu2 %v541_v40, %s1901_s23 }
 0xede   :  { %v544_v27 = vpop.permute.xlu2 %543 }
 0xedf   :  { %v546_v28 = vadd.f32 %v544_v27, %v1995_v13 }
 0xee1   :  { %1814 = vtanh.f32 %v546_v28 }
 0xee7   :  { %v1815_v29 = vpop.eup %1814 }
 0xee8   :  { %550 = vrot.lane.b32.xlu0 %v1815_v29, %s1903_s26  ;;  %v1770_v29 = vld [vmem:[%s2375_s1 + $0x89] ss:$0 sm:$0xff] }
 0xf5a   :  { %v551_v32 = vpop.permute.xlu0 %550 }
 0xf5b   :  { %v553_v34 = vmul.f32 %v551_v32, %v548_v31 }
 0xf5d   :  { %v557_v35 = vadd.f32 %v556_v33, %v553_v34 }
 0xf5f   :  { %v559_v36 = vrot.slane %v557_v35, 4  ;;  %v626_v54 = vrot.slane %v557_v35, 6 }
 0xf61   :  { %560 = vrot.lane.b32.xlu1 %v559_v36, %s1903_s26 }
 0xfd3   :  { %v561_v37 = vpop.permute.xlu1 %560 }
 0xfd4   :  { %1727 = vmatmul.msk.f32.vlgmr.msra.gmra.mxu1 %vm65_vm6, %v561_v37 }
0x1051   :  { %v581_v38 = vpop.f32.mrf.mxu1 }
0x1052   :  { %v585_v39 = vrot.slane %v581_v38, 2  ;;  %v607_v41 = vadd.f32 %v581_v38, %v1943_v8 }
0x1054   :  { %v587_v42 = vadd.f32 %v585_v39, %v1995_v13  ;;  %v609_v43 = vrot.slane %v607_v41, 2 }
0x1056   :  { %v1728_v44 = vmul.f32 -1.442695, %v587_v42  ;;  %610 = vrot.lane.b32.xlu2 %v609_v43, %s1901_s23 }
0x1058   :  { %1816 = vpow2.f32 %v1728_v44 }
0x105e   :  { %v1817_v45 = vpop.eup %1816 }
0x105f   :  { %v591_v46 = vadd.f32 1.0, %v1817_v45 }
0x1061   :  { %1818 = vrcp.f32 %v591_v46  ;;  %v603_v50 = vand.u32 2147483648, %v591_v46  ;;  %v601_v52 = vand.u32 2147483647, %v591_v46  ;;  %vm597_vm5 = vweird.f32 %v591_v46 }
0x1063   :  { %v604_v8 = vor.u32 1.1754944e-38, %v603_v50  ;;  %vm602_vm8 = vcmp.eq.f32.partialorder %v601_v52, 8.507059e+37 }
0x1067   :  { %v1819_v47 = vpop.eup %1818 }
0x1068   :  { %v593_v48 = vmul.f32 %v1819_v47, %v591_v46  ;;  %vm598_vm4 = vweird.f32 %v1819_v47 }
0x1069   :  { %vm599_vm7 = vmor %vm597_vm5, %vm598_vm4 }
0x106a   :  { %v594_v49 = vsub.f32 1.0, %v593_v48 }
0x106c   :  { %v595_v51 = vmul.f32 %v1819_v47, %v594_v49 }
0x106e   :  { %v596_v53 = vadd.f32 %v1819_v47, %v595_v51 }
0x1070   :  { %v600_v55 = vsel %vm599_vm7, %v1819_v47, %v596_v53 }
0x1071   :  { %v605_v56 = vsel %vm602_vm8, %v604_v8, %v600_v55 }
0x1072   :  { %v628_v57 = vmul.f32 %v626_v54, %v605_v56  ;;  %v620_v6 = vsub.f32 1.0, %v605_v56 }
0x10b0   :  { %v611_v58 = vpop.permute.xlu2 %610 }
0x10b1   :  { %v613_v59 = vmul.f32 %v611_v58, %v605_v56 }
0x10b3   :  { %615 = vrot.lane.b32.xlu0 %v613_v59, %s1901_s23 }
0x10bb   :  { %761 = vrot.lane.b32.xlu0 %v1767_v18, %s1901_s23 }
0x1125   :  { %v616_v60 = vpop.permute.xlu0 %615 }
0x1126   :  { %v618_v61 = vadd.f32 %v616_v60, %v1995_v13  ;;  %v2040_v13 = vld [vmem:[%s2375_s1 + $0x48] sm:$0xff] }
0x1127   :  { %733 = vmatpush.msrb.mxu1 %v2040_v13  ;;  %867 = vmatpush.msrb.mxu3 %v2040_v13 }
0x1128   :  { %1820 = vtanh.f32 %v618_v61 }
0x1129   :  { %734 = vmatpush.msrb.mxu1 %v2048_v3  ;;  %868 = vmatpush.msrb.mxu3 %v2048_v3 }
0x112b   :  { %735 = vmatpush.msrb.mxu1 %v2057_v5  ;;  %869 = vmatpush.msrb.mxu3 %v2057_v5 }
0x112d   :  { %996 = vmatpush.msra.mxu1 %v2031_v0  ;;  %v2108_v24 = vpop.permute.xlu0 %761 }
0x112e   :  { %v1821_v62 = vpop.eup %1820 }
0x112f   :  { %622 = vrot.lane.b32.xlu1 %v1821_v62, %s1903_s26  ;;  %997 = vmatpush.msra.mxu1 %v2040_v13 }
0x1131   :  { %998 = vmatpush.msra.mxu1 %v2048_v3 }
0x1133   :  { %999 = vmatpush.msra.mxu1 %v2057_v5 }
0x11a1   :  { %v623_v7 = vpop.permute.xlu1 %622 }
0x11a2   :  { %v625_v9 = vmul.f32 %v623_v7, %v620_v6 }
0x11a4   :  { %v629_v10 = vadd.f32 %v628_v57, %v625_v9 }
0x11a6   :  { %v2065_v12 = vrot.slane %v629_v10, 6 }
0x11a8   :  { %637 = vrot.lane.b32.xlu2 %v2065_v12, %s1903_s26 }
0x1202   :  { %v638_v19 = vpop.permute.xlu2 %637 }
0x1203   :  { %1729 = vmatmul.msk.f32.vlgmr.msrb.gmra.mxu2 %vm65_vm6, %v638_v19  ;;  %1732 = vmatmul.msk.f32.vlgmr.msrb.gmra.mxu1 %vm65_vm6, %v638_v19 }
0x1204   :  { %1256 = vmatpush.msrb.mxu1 %v2031_v0  ;;  %1061 = vmatpush.msrb.mxu2 %v719_v14 }
0x1206   :  { %1257 = vmatpush.msrb.mxu1 %v2040_v13  ;;  %1062 = vmatpush.msrb.mxu2 %v718_v15 }
0x1208   :  { %1258 = vmatpush.msrb.mxu1 %v2048_v3  ;;  %1063 = vmatpush.msrb.mxu2 %v717_v16 }
0x120a   :  { %1259 = vmatpush.msrb.mxu1 %v2057_v5  ;;  %1064 = vmatpush.msrb.mxu2 %v716_v17 }
0x120b   :  { %1734 = vmatmul.msk.f32.vlgmr.msra.gmra.mxu2 %vm65_vm6, %v638_v19 }
0x120c   :  { %1321 = vmatpush.msra.mxu2 %v719_v14 }
0x120e   :  { %1322 = vmatpush.msra.mxu2 %v718_v15 }
0x1210   :  { %1323 = vmatpush.msra.mxu2 %v717_v16 }
0x1212   :  { %1324 = vmatpush.msra.mxu2 %v716_v17 }
0x1280   :  { %v737_v25 = vpop.f32.mrf.mxu1 }
0x1281   :  { %v764_v26 = vadd.f32 %v2108_v24, %v737_v25 }
0x1283   :  { %766 = vrot.lane.b32.xlu1 %v764_v26, %s1901_s23 }
0x1286   :  { %v658_v40 = vpop.f32.mrf.mxu2 }
0x1287   :  { %v659_v27 = vadd.f32 %v1768_v11, %v658_v40 }
0x1289   :  { %v661_v28 = vmax.f32 %v659_v27, 0.0 }
0x128b   :  { %1730 = vmatmul.msk.f32.vlgmr.msra.gmra.mxu3 %vm665_vm9, %v661_v28  ;;  %1731 = vmatmul.msk.f32.vlgmr.msrb.gmra.mxu0 %vm665_vm9, %v661_v28 }
0x128c   :  { %1126 = vmatpush.msra.mxu3 %v2031_v0  ;;  %1191 = vmatpush.msrb.mxu0 %v719_v14 }
0x128e   :  { %1127 = vmatpush.msra.mxu3 %v2040_v13  ;;  %1192 = vmatpush.msrb.mxu0 %v718_v15 }
0x1290   :  { %1128 = vmatpush.msra.mxu3 %v2048_v3  ;;  %1193 = vmatpush.msrb.mxu0 %v717_v16 }
0x1292   :  { %1129 = vmatpush.msra.mxu3 %v2057_v5  ;;  %1194 = vmatpush.msrb.mxu0 %v716_v17 }
0x12f5   :  { %v767_v46 = vpop.permute.xlu1 %766 }
0x130e   :  { %v686_v30 = vpop.f32.mrf.mxu3 }
0x130f   :  { %v2122_v31 = vadd.f32 %v1770_v29, %v686_v30 }
0x1311   :  { %v740_v32 = vadd.f32 %v737_v25, %v2122_v31 }
0x1313   :  { %v1733_v33 = vmul.f32 -1.442695, %v740_v32 }
0x1315   :  { %1822 = vpow2.f32 %v1733_v33 }
0x131b   :  { %v1823_v34 = vpop.eup %1822 }
0x131c   :  { %v744_v35 = vadd.f32 1.0, %v1823_v34 }
0x131e   :  { %1824 = vrcp.f32 %v744_v35  ;;  %v756_v39 = vand.u32 2147483648, %v744_v35  ;;  %v754_v42 = vand.u32 2147483647, %v744_v35  ;;  %vm750_vm11 = vweird.f32 %v744_v35 }
0x1320   :  { %v757_v44 = vor.u32 1.1754944e-38, %v756_v39  ;;  %vm755_vm13 = vcmp.eq.f32.partialorder %v754_v42, 8.507059e+37 }
0x1324   :  { %v1825_v36 = vpop.eup %1824 }
0x1325   :  { %v746_v37 = vmul.f32 %v1825_v36, %v744_v35  ;;  %vm751_vm10 = vweird.f32 %v1825_v36 }
0x1326   :  { %vm752_vm12 = vmor %vm750_vm11, %vm751_vm10 }
0x1327   :  { %v747_v38 = vsub.f32 1.0, %v746_v37 }
0x1329   :  { %v748_v41 = vmul.f32 %v1825_v36, %v747_v38 }
0x132b   :  { %v749_v43 = vadd.f32 %v1825_v36, %v748_v41 }
0x132d   :  { %v753_v45 = vsel %vm752_vm12, %v1825_v36, %v749_v43 }
0x132e   :  { %v758_v47 = vsel %vm755_vm13, %v757_v44, %v753_v45 }
0x132f   :  { %v769_v48 = vmul.f32 %v767_v46, %v758_v47  ;;  %v776_v52 = vsub.f32 1.0, %v758_v47  ;;  %v783_v8 = vmul.f32 %v758_v47, %v2065_v12  ;;  %v1771_v46 = vld [vmem:[%s2375_s1 + $0x8d] ss:$0 sm:$0xff] }
0x1331   :  { %771 = vrot.lane.b32.xlu2 %v769_v48, %s1901_s23 }
0x138b   :  { %v772_v49 = vpop.permute.xlu2 %771 }
0x138c   :  { %v774_v50 = vadd.f32 %v772_v49, %v2122_v31 }
0x138e   :  { %1826 = vtanh.f32 %v774_v50 }
0x1394   :  { %v1827_v51 = vpop.eup %1826 }
0x1395   :  { %778 = vrot.lane.b32.xlu0 %v1827_v51, %s1903_s26  ;;  %v802_v51 = vpop.f32.mrf.mxu2 }
0x1407   :  { %v779_v53 = vpop.permute.xlu0 %778 }
0x1408   :  { %v781_v54 = vmul.f32 %v779_v53, %v776_v52  ;;  %v1769_v53 = vld [vmem:[%s2375_s1 + $0x8a] ss:$0 sm:$0xff] }
0x140a   :  { %v2129_v55 = vadd.f32 %v783_v8, %v781_v54  ;;  %v709_v8 = vpop.f32.mrf.mxu0 }
0x140b   :  { %v2171_v54 = vadd.f32 %v1769_v53, %v709_v8 }
0x140c   :  { %850 = vrot.lane.b32.xlu1 %v2129_v55, %s1903_s26 }
0x147e   :  { %v851_v56 = vpop.permute.xlu1 %850 }
0x147f   :  { %1736 = vmatmul.msk.f32.vlgmr.msrb.gmra.mxu3 %vm65_vm6, %v851_v56  ;;  %v805_v56 = vadd.f32 %v802_v51, %v2171_v54 }
0x1480   :  { %1386 = vmatpush.msrb.mxu3 %v2031_v0 }
0x1482   :  { %1387 = vmatpush.msrb.mxu3 %v2040_v13 }
0x1484   :  { %1388 = vmatpush.msrb.mxu3 %v2048_v3 }
0x1486   :  { %1389 = vmatpush.msrb.mxu3 %v2057_v5 }
0x1502   :  { %v871_v57 = vpop.f32.mrf.mxu3 }
0x1503   :  { %v894_v58 = vadd.f32 %v871_v57, %v2108_v24  ;;  %v874_v59 = vadd.f32 %v871_v57, %v2122_v31  ;;  %v1735_v57 = vmul.f32 -1.442695, %v805_v56 }
0x1505   :  { %896 = vrot.lane.b32.xlu2 %v894_v58, %s1901_s23  ;;  %v1737_v60 = vmul.f32 -1.442695, %v874_v59 }
0x1507   :  { %1828 = vpow2.f32 %v1737_v60 }
0x150d   :  { %v1829_v61 = vpop.eup %1828 }
0x150e   :  { %v878_v62 = vadd.f32 1.0, %v1829_v61 }
0x1510   :  { %1830 = vrcp.f32 %v878_v62  ;;  %v890_v7 = vand.u32 2147483648, %v878_v62  ;;  %vm884_vm15 = vweird.f32 %v878_v62  ;;  %v888_v9 = vand.u32 2147483647, %v878_v62 }
0x1512   :  { %v891_v14 = vor.u32 1.1754944e-38, %v890_v7  ;;  %vm889_vm3 = vcmp.eq.f32.partialorder %v888_v9, 8.507059e+37 }
0x1516   :  { %v1831_v63 = vpop.eup %1830 }
0x1517   :  { %v880_v1 = vmul.f32 %v1831_v63, %v878_v62  ;;  %vm885_vm14 = vweird.f32 %v1831_v63 }
0x1518   :  { %vm886_vm2 = vmor %vm884_vm15, %vm885_vm14 }
0x1519   :  { %v881_v2 = vsub.f32 1.0, %v880_v1 }
0x151b   :  { %v882_v4 = vmul.f32 %v1831_v63, %v881_v2 }
0x151d   :  { %v883_v6 = vadd.f32 %v1831_v63, %v882_v4 }
0x151f   :  { %v887_v10 = vsel %vm886_vm2, %v1831_v63, %v883_v6 }
0x1520   :  { %v892_v16 = vsel %vm889_vm3, %v891_v14, %v887_v10 }
0x1521   :  { %v906_v21 = vsub.f32 1.0, %v892_v16  ;;  %v912_v23 = vmul.f32 %v892_v16, %v2129_v55 }
0x155f   :  { %v897_v15 = vpop.permute.xlu2 %896 }
0x1560   :  { %v899_v17 = vmul.f32 %v897_v15, %v892_v16 }
0x1562   :  { %901 = vrot.lane.b32.xlu0 %v899_v17, %s1901_s23 }
0x15d4   :  { %v902_v18 = vpop.permute.xlu0 %901 }
0x15d5   :  { %v904_v19 = vadd.f32 %v902_v18, %v2122_v31 }
0x15d7   :  { %1832 = vtanh.f32 %v904_v19 }
0x15dd   :  { %v1833_v20 = vpop.eup %1832 }
0x15de   :  { %908 = vrot.lane.b32.xlu1 %v1833_v20, %s1903_s26 }
0x1650   :  { %v909_v22 = vpop.permute.xlu1 %908 }
0x1651   :  { %v911_v25 = vmul.f32 %v909_v22, %v906_v21 }
0x1653   :  { %v2145_v26 = vadd.f32 %v912_v23, %v911_v25 }
0x1655   :  { %980 = vrot.lane.b32.xlu2 %v2145_v26, %s1903_s26 }
0x16af   :  { %v981_v11 = vpop.permute.xlu2 %980 }
0x16b0   :  { %1740 = vmatmul.msk.f32.vlgmr.msra.gmra.mxu1 %vm65_vm6, %v981_v11 }
0x16b1   :  { %1516 = vmatpush.msra.mxu1 %v2031_v0 }
0x16b3   :  { %1517 = vmatpush.msra.mxu1 %v2040_v13 }
0x16b5   :  { %1518 = vmatpush.msra.mxu1 %v2048_v3 }
0x16b7   :  { %1519 = vmatpush.msra.mxu1 %v2057_v5 }
0x172d   :  { %v1001_v40 = vpop.f32.mrf.mxu1 }
0x172e   :  { %v1024_v27 = vadd.f32 %v1001_v40, %v2108_v24  ;;  %v1004_v28 = vadd.f32 %v1001_v40, %v2122_v31 }
0x1730   :  { %1026 = vrot.lane.b32.xlu0 %v1024_v27, %s1901_s23  ;;  %v1741_v29 = vmul.f32 -1.442695, %v1004_v28 }
0x1732   :  { %1834 = vpow2.f32 %v1741_v29 }
0x1738   :  { %v1835_v30 = vpop.eup %1834 }
0x1739   :  { %v1008_v32 = vadd.f32 1.0, %v1835_v30 }
0x173b   :  { %1836 = vrcp.f32 %v1008_v32  ;;  %v1020_v38 = vand.u32 2147483648, %v1008_v32  ;;  %vm1014_vm5 = vweird.f32 %v1008_v32  ;;  %v1018_v39 = vand.u32 2147483647, %v1008_v32 }
0x173d   :  { %v1021_v42 = vor.u32 1.1754944e-38, %v1020_v38  ;;  %vm1019_vm8 = vcmp.eq.f32.partialorder %v1018_v39, 8.507059e+37 }
0x1741   :  { %v1837_v33 = vpop.eup %1836 }
0x1742   :  { %v1010_v34 = vmul.f32 %v1837_v33, %v1008_v32  ;;  %vm1015_vm4 = vweird.f32 %v1837_v33 }
0x1743   :  { %vm1016_vm7 = vmor %vm1014_vm5, %vm1015_vm4 }
0x1744   :  { %v1011_v35 = vsub.f32 1.0, %v1010_v34 }
0x1746   :  { %v1012_v36 = vmul.f32 %v1837_v33, %v1011_v35 }
0x1748   :  { %v1013_v37 = vadd.f32 %v1837_v33, %v1012_v36 }
0x174a   :  { %v1017_v41 = vsel %vm1016_vm7, %v1837_v33, %v1013_v37 }
0x174b   :  { %v1022_v44 = vsel %vm1019_vm8, %v1021_v42, %v1017_v41 }
0x174c   :  { %v1036_v1 = vsub.f32 1.0, %v1022_v44  ;;  %v1042_v4 = vmul.f32 %v1022_v44, %v2145_v26 }
0x17a2   :  { %v1027_v43 = vpop.permute.xlu0 %1026 }
0x17a3   :  { %v1029_v45 = vmul.f32 %v1027_v43, %v1022_v44 }
0x17a5   :  { %1031 = vrot.lane.b32.xlu1 %v1029_v45, %s1901_s23 }
0x17ad   :  { %826 = vrot.lane.b32.xlu1 %v1771_v46, %s1901_s23 }
0x1817   :  { %v1032_v47 = vpop.permute.xlu1 %1031 }
0x1818   :  { %v1034_v48 = vadd.f32 %v1032_v47, %v2122_v31 }
0x181a   :  { %1838 = vtanh.f32 %v1034_v48 }
0x181b   :  { %1840 = vpow2.f32 %v1735_v57 }
0x181f   :  { %v2164_v50 = vpop.permute.xlu1 %826 }
0x1820   :  { %v1839_v49 = vpop.eup %1838  ;;  %v829_v52 = vadd.f32 %v2164_v50, %v802_v51 }
0x1821   :  { %1038 = vrot.lane.b32.xlu2 %v1839_v49, %s1903_s26  ;;  %v1841_v58 = vpop.eup %1840 }
0x1822   :  { %v809_v59 = vadd.f32 1.0, %v1841_v58 }
0x1824   :  { %1842 = vrcp.f32 %v809_v59  ;;  %v821_v9 = vand.u32 2147483648, %v809_v59  ;;  %vm815_vm10 = vweird.f32 %v809_v59  ;;  %v819_v14 = vand.u32 2147483647, %v809_v59 }
0x1826   :  { %v822_v16 = vor.u32 1.1754944e-38, %v821_v9  ;;  %vm820_vm12 = vcmp.eq.f32.partialorder %v819_v14, 8.507059e+37 }
0x1829   :  { %831 = vrot.lane.b32.xlu2 %v829_v52, %s1901_s23 }
0x182a   :  { %v1843_v60 = vpop.eup %1842 }
0x182b   :  { %v811_v61 = vmul.f32 %v1843_v60, %v809_v59  ;;  %vm816_vm9 = vweird.f32 %v1843_v60 }
0x182c   :  { %vm817_vm11 = vmor %vm815_vm10, %vm816_vm9 }
0x182d   :  { %v812_v62 = vsub.f32 1.0, %v811_v61 }
0x182f   :  { %v813_v63 = vmul.f32 %v1843_v60, %v812_v62 }
0x1831   :  { %v814_v7 = vadd.f32 %v1843_v60, %v813_v63 }
0x1833   :  { %v818_v15 = vsel %vm817_vm11, %v1843_v60, %v814_v7 }
0x1834   :  { %v823_v17 = vsel %vm820_vm12, %v822_v16, %v818_v15 }
0x1835   :  { %v841_v44 = vsub.f32 1.0, %v823_v17  ;;  %v847_v46 = vmul.f32 %v823_v17, %v2065_v12 }
0x187b   :  { %v1039_v2 = vpop.permute.xlu2 %1038 }
0x187c   :  { %v1041_v6 = vmul.f32 %v1039_v2, %v1036_v1 }
0x187e   :  { %v2175_v10 = vadd.f32 %v1042_v4, %v1041_v6 }
0x1880   :  { %1110 = vrot.lane.b32.xlu0 %v2175_v10, %s1903_s26 }
0x1883   :  { %v832_v18 = vpop.permute.xlu2 %831 }
0x1884   :  { %v834_v19 = vmul.f32 %v832_v18, %v823_v17 }
0x1886   :  { %836 = vrot.lane.b32.xlu1 %v834_v19, %s1901_s23 }
0x18f2   :  { %v1111_v20 = vpop.permute.xlu0 %1110 }
0x18f3   :  { %1744 = vmatmul.msk.f32.vlgmr.msra.gmra.mxu3 %vm65_vm6, %v1111_v20 }
0x18f8   :  { %v837_v21 = vpop.permute.xlu1 %836 }
0x18f9   :  { %v839_v22 = vadd.f32 %v837_v21, %v2171_v54 }
0x18fb   :  { %1844 = vtanh.f32 %v839_v22 }
0x1901   :  { %v1845_v11 = vpop.eup %1844 }
0x1976   :  { %v1131_v23 = vpop.f32.mrf.mxu3 }
0x1977   :  { %v1154_v25 = vadd.f32 %v1131_v23, %v2108_v24  ;;  %v1134_v40 = vadd.f32 %v1131_v23, %v2122_v31 }
0x1979   :  { %1156 = vrot.lane.b32.xlu0 %v1154_v25, %s1901_s23  ;;  %v1745_v27 = vmul.f32 -1.442695, %v1134_v40 }
0x197b   :  { %1846 = vpow2.f32 %v1745_v27 }
0x1981   :  { %843 = vrot.lane.b32.xlu0 %v1845_v11, %s1903_s26  ;;  %v1847_v28 = vpop.eup %1846 }
0x1982   :  { %v1138_v29 = vadd.f32 1.0, %v1847_v28 }
0x1984   :  { %1848 = vrcp.f32 %v1138_v29  ;;  %v1150_v36 = vand.u32 2147483648, %v1138_v29  ;;  %vm1144_vm14 = vweird.f32 %v1138_v29  ;;  %v1148_v37 = vand.u32 2147483647, %v1138_v29 }
0x1986   :  { %v1151_v39 = vor.u32 1.1754944e-38, %v1150_v36  ;;  %vm1149_vm2 = vcmp.eq.f32.partialorder %v1148_v37, 8.507059e+37 }
0x198a   :  { %v1849_v30 = vpop.eup %1848 }
0x198b   :  { %v1140_v32 = vmul.f32 %v1849_v30, %v1138_v29  ;;  %vm1145_vm13 = vweird.f32 %v1849_v30 }
0x198c   :  { %vm1146_vm15 = vmor %vm1144_vm14, %vm1145_vm13 }
0x198d   :  { %v1141_v33 = vsub.f32 1.0, %v1140_v32 }
0x198f   :  { %v1142_v34 = vmul.f32 %v1849_v30, %v1141_v33 }
0x1991   :  { %v1143_v35 = vadd.f32 %v1849_v30, %v1142_v34 }
0x1993   :  { %v1147_v38 = vsel %vm1146_vm15, %v1849_v30, %v1143_v35 }
0x1994   :  { %v1152_v42 = vsel %vm1149_vm2, %v1151_v39, %v1147_v38 }
0x1995   :  { %v1166_v12 = vsub.f32 1.0, %v1152_v42  ;;  %v1172_v56 = vmul.f32 %v1152_v42, %v2175_v10 }
0x19eb   :  { %v1157_v41 = vpop.permute.xlu0 %1156 }
0x19ec   :  { %v1159_v43 = vmul.f32 %v1157_v41, %v1152_v42 }
0x19ee   :  { %1161 = vrot.lane.b32.xlu2 %v1159_v43, %s1901_s23 }
0x19f3   :  { %v844_v45 = vpop.permute.xlu0 %843 }
0x19f4   :  { %v846_v47 = vmul.f32 %v844_v45, %v841_v44 }
0x19f6   :  { %v2188_v48 = vadd.f32 %v847_v46, %v846_v47 }
0x19f8   :  { %915 = vrot.lane.b32.xlu2 %v2188_v48, %s1903_s26 }
0x1a48   :  { %v1162_v49 = vpop.permute.xlu2 %1161 }
0x1a49   :  { %v1164_v51 = vadd.f32 %v1162_v49, %v2122_v31 }
0x1a4b   :  { %1850 = vtanh.f32 %v1164_v51 }
0x1a51   :  { %v1851_v52 = vpop.eup %1850 }
0x1a52   :  { %1168 = vrot.lane.b32.xlu1 %v1851_v52, %s1903_s26  ;;  %v916_v53 = vpop.permute.xlu2 %915 }
0x1a53   :  { %1738 = vmatmul.msk.f32.vlgmr.msra.gmra.mxu0 %vm65_vm6, %v916_v53 }
0x1a54   :  { %1451 = vmatpush.msra.mxu0 %v2031_v0 }
0x1a56   :  { %1452 = vmatpush.msra.mxu0 %v2040_v13 }
0x1a58   :  { %1453 = vmatpush.msra.mxu0 %v2048_v3 }
0x1a5a   :  { %1454 = vmatpush.msra.mxu0 %v2057_v5 }
0x1ac4   :  { %v1169_v8 = vpop.permute.xlu1 %1168 }
0x1ac5   :  { %v1171_v57 = vmul.f32 %v1169_v8, %v1166_v12 }
0x1ac7   :  { %v2200_v58 = vadd.f32 %v1172_v56, %v1171_v57 }
0x1ac9   :  { %1240 = vrot.lane.b32.xlu0 %v2200_v58, %s1903_s26 }
0x1ad0   :  { %v936_v59 = vpop.f32.mrf.mxu0 }
0x1ad1   :  { %v959_v60 = vadd.f32 %v936_v59, %v2164_v50  ;;  %v939_v0 = vadd.f32 %v936_v59, %v2171_v54 }
0x1ad3   :  { %961 = vrot.lane.b32.xlu1 %v959_v60, %s1901_s23  ;;  %v1739_v13 = vmul.f32 -1.442695, %v939_v0 }
0x1ad5   :  { %1852 = vpow2.f32 %v1739_v13 }
0x1adb   :  { %v1853_v3 = vpop.eup %1852 }
0x1adc   :  { %v943_v5 = vadd.f32 1.0, %v1853_v3 }
0x1ade   :  { %1854 = vrcp.f32 %v943_v5  ;;  %v955_v6 = vand.u32 2147483648, %v943_v5  ;;  %vm949_vm4 = vweird.f32 %v943_v5  ;;  %v953_v7 = vand.u32 2147483647, %v943_v5 }
0x1ae0   :  { %v956_v14 = vor.u32 1.1754944e-38, %v955_v6  ;;  %vm954_vm7 = vcmp.eq.f32.partialorder %v953_v7, 8.507059e+37 }
0x1ae4   :  { %v1855_v61 = vpop.eup %1854 }
0x1ae5   :  { %v945_v62 = vmul.f32 %v1855_v61, %v943_v5  ;;  %vm950_vm3 = vweird.f32 %v1855_v61 }
0x1ae6   :  { %vm951_vm5 = vmor %vm949_vm4, %vm950_vm3 }
0x1ae7   :  { %v946_v63 = vsub.f32 1.0, %v945_v62 }
0x1ae9   :  { %v947_v1 = vmul.f32 %v1855_v61, %v946_v63 }
0x1aeb   :  { %v948_v4 = vadd.f32 %v1855_v61, %v947_v1 }
0x1aed   :  { %v952_v9 = vsel %vm951_vm5, %v1855_v61, %v948_v4 }
0x1aee   :  { %v957_v16 = vsel %vm954_vm7, %v956_v14, %v952_v9 }
0x1aef   :  { %v971_v41 = vsub.f32 1.0, %v957_v16  ;;  %v977_v43 = vmul.f32 %v957_v16, %v2188_v48 }
0x1b3b   :  { %v1241_v2 = vpop.permute.xlu0 %1240 }
0x1b3c   :  { %1748 = vmatmul.msk.f32.vlgmr.msrb.gmra.mxu1 %vm65_vm6, %v1241_v2 }
0x1b45   :  { %v962_v15 = vpop.permute.xlu1 %961 }
0x1b46   :  { %v964_v17 = vmul.f32 %v962_v15, %v957_v16 }
0x1b48   :  { %966 = vrot.lane.b32.xlu0 %v964_v17, %s1901_s23 }
0x1bb9   :  { %v1261_v18 = vpop.f32.mrf.mxu1 }
0x1bba   :  { %v1284_v19 = vadd.f32 %v1261_v18, %v2108_v24  ;;  %v967_v20 = vpop.permute.xlu0 %966  ;;  %v1264_v23 = vadd.f32 %v1261_v18, %v2122_v31 }
0x1bbb   :  { %v969_v21 = vadd.f32 %v967_v20, %v2171_v54 }
0x1bbc   :  { %1286 = vrot.lane.b32.xlu2 %v1284_v19, %s1901_s23  ;;  %v1749_v25 = vmul.f32 -1.442695, %v1264_v23 }
0x1bbd   :  { %1856 = vtanh.f32 %v969_v21 }
0x1bbe   :  { %1858 = vpow2.f32 %v1749_v25 }
0x1bc3   :  { %v1857_v22 = vpop.eup %1856 }
0x1bc4   :  { %973 = vrot.lane.b32.xlu2 %v1857_v22, %s1903_s26  ;;  %v1859_v11 = vpop.eup %1858 }
0x1bc5   :  { %v1268_v40 = vadd.f32 1.0, %v1859_v11 }
0x1bc7   :  { %1860 = vrcp.f32 %v1268_v40  ;;  %v1280_v33 = vand.u32 2147483648, %v1268_v40  ;;  %vm1274_vm9 = vweird.f32 %v1268_v40  ;;  %v1278_v34 = vand.u32 2147483647, %v1268_v40 }
0x1bc9   :  { %v1281_v36 = vor.u32 1.1754944e-38, %v1280_v33  ;;  %vm1279_vm11 = vcmp.eq.f32.partialorder %v1278_v34, 8.507059e+37 }
0x1bcd   :  { %v1861_v27 = vpop.eup %1860 }
0x1bce   :  { %v1270_v28 = vmul.f32 %v1861_v27, %v1268_v40  ;;  %vm1275_vm8 = vweird.f32 %v1861_v27 }
0x1bcf   :  { %vm1276_vm10 = vmor %vm1274_vm9, %vm1275_vm8 }
0x1bd0   :  { %v1271_v29 = vsub.f32 1.0, %v1270_v28 }
0x1bd2   :  { %v1272_v30 = vmul.f32 %v1861_v27, %v1271_v29 }
0x1bd4   :  { %v1273_v32 = vadd.f32 %v1861_v27, %v1272_v30 }
0x1bd6   :  { %v1277_v35 = vsel %vm1276_vm10, %v1861_v27, %v1273_v32 }
0x1bd7   :  { %v1282_v37 = vsel %vm1279_vm11, %v1281_v36, %v1277_v35 }
0x1bd8   :  { %v1296_v52 = vsub.f32 1.0, %v1282_v37  ;;  %v1302_v12 = vmul.f32 %v1282_v37, %v2200_v58 }
0x1c16   :  { %v1287_v38 = vpop.permute.xlu2 %1286 }
0x1c17   :  { %v1289_v39 = vmul.f32 %v1287_v38, %v1282_v37 }
0x1c19   :  { %1291 = vrot.lane.b32.xlu1 %v1289_v39, %s1901_s23 }
0x1c1e   :  { %v974_v42 = vpop.permute.xlu2 %973 }
0x1c1f   :  { %v976_v44 = vmul.f32 %v974_v42, %v971_v41 }
0x1c21   :  { %v2216_v45 = vadd.f32 %v977_v43, %v976_v44 }
0x1c23   :  { %1045 = vrot.lane.b32.xlu1 %v2216_v45, %s1903_s26 }
0x1c8b   :  { %v1292_v46 = vpop.permute.xlu1 %1291 }
0x1c8c   :  { %v1294_v47 = vadd.f32 %v1292_v46, %v2122_v31 }
0x1c8e   :  { %1862 = vtanh.f32 %v1294_v47 }
0x1c94   :  { %v1863_v49 = vpop.eup %1862 }
0x1c95   :  { %1298 = vrot.lane.b32.xlu0 %v1863_v49, %s1903_s26  ;;  %v1046_v51 = vpop.permute.xlu1 %1045 }
0x1c96   :  { %1742 = vmatmul.msk.f32.vlgmr.msrb.gmra.mxu2 %vm65_vm6, %v1046_v51 }
0x1d07   :  { %v1299_v53 = vpop.permute.xlu0 %1298 }
0x1d08   :  { %v1301_v8 = vmul.f32 %v1299_v53, %v1296_v52 }
0x1d0a   :  { %v2224_v56 = vadd.f32 %v1302_v12, %v1301_v8 }
0x1d0c   :  { %1370 = vrot.lane.b32.xlu2 %v2224_v56, %s1903_s26 }
0x1d19   :  { %v1066_v57 = vpop.f32.mrf.mxu2 }
0x1d1a   :  { %v1089_v59 = vadd.f32 %v1066_v57, %v2164_v50  ;;  %v1069_v60 = vadd.f32 %v1066_v57, %v2171_v54 }
0x1d1c   :  { %1091 = vrot.lane.b32.xlu0 %v1089_v59, %s1901_s23  ;;  %v1743_v0 = vmul.f32 -1.442695, %v1069_v60 }
0x1d1e   :  { %1864 = vpow2.f32 %v1743_v0 }
0x1d24   :  { %v1865_v3 = vpop.eup %1864 }
0x1d25   :  { %v1073_v5 = vadd.f32 1.0, %v1865_v3 }
0x1d27   :  { %1866 = vrcp.f32 %v1073_v5  ;;  %v1085_v4 = vand.u32 2147483648, %v1073_v5  ;;  %vm1079_vm13 = vweird.f32 %v1073_v5  ;;  %v1083_v6 = vand.u32 2147483647, %v1073_v5 }
0x1d29   :  { %v1086_v9 = vor.u32 1.1754944e-38, %v1085_v4  ;;  %vm1084_vm15 = vcmp.eq.f32.partialorder %v1083_v6, 8.507059e+37 }
0x1d2d   :  { %v1867_v61 = vpop.eup %1866 }
0x1d2e   :  { %v1075_v62 = vmul.f32 %v1867_v61, %v1073_v5  ;;  %vm1080_vm12 = vweird.f32 %v1867_v61 }
0x1d2f   :  { %vm1081_vm14 = vmor %vm1079_vm13, %vm1080_vm12 }
0x1d30   :  { %v1076_v63 = vsub.f32 1.0, %v1075_v62 }
0x1d32   :  { %v1077_v1 = vmul.f32 %v1867_v61, %v1076_v63 }
0x1d34   :  { %v1078_v2 = vadd.f32 %v1867_v61, %v1077_v1 }
0x1d36   :  { %v1082_v7 = vsel %vm1081_vm14, %v1867_v61, %v1078_v2 }
0x1d37   :  { %v1087_v15 = vsel %vm1084_vm15, %v1086_v9, %v1082_v7 }
0x1d38   :  { %v1101_v39 = vsub.f32 1.0, %v1087_v15  ;;  %v1107_v42 = vmul.f32 %v1087_v15, %v2216_v45 }
0x1d66   :  { %v1371_v13 = vpop.permute.xlu2 %1370 }
0x1d67   :  { %1752 = vmatmul.msk.f32.vlgmr.msrb.gmra.mxu3 %vm65_vm6, %v1371_v13 }
0x1d8e   :  { %v1092_v14 = vpop.permute.xlu0 %1091 }
0x1d8f   :  { %v1094_v16 = vmul.f32 %v1092_v14, %v1087_v15 }
0x1d91   :  { %1096 = vrot.lane.b32.xlu2 %v1094_v16, %s1901_s23 }
0x1dea   :  { %v1391_v17 = vpop.f32.mrf.mxu3 }
0x1deb   :  { %v1414_v18 = vadd.f32 %v1391_v17, %v2108_v24  ;;  %v1097_v19 = vpop.permute.xlu2 %1096  ;;  %v1394_v22 = vadd.f32 %v1391_v17, %v2122_v31 }
0x1dec   :  { %v1099_v20 = vadd.f32 %v1097_v19, %v2171_v54 }
0x1ded   :  { %1416 = vrot.lane.b32.xlu1 %v1414_v18, %s1901_s23  ;;  %v1753_v23 = vmul.f32 -1.442695, %v1394_v22 }
0x1dee   :  { %1868 = vtanh.f32 %v1099_v20 }
0x1def   :  { %1870 = vpow2.f32 %v1753_v23 }
0x1df4   :  { %v1869_v21 = vpop.eup %1868 }
0x1df5   :  { %1103 = vrot.lane.b32.xlu1 %v1869_v21, %s1903_s26  ;;  %v1871_v25 = vpop.eup %1870 }
0x1df6   :  { %v1398_v11 = vadd.f32 1.0, %v1871_v25 }
0x1df8   :  { %1872 = vrcp.f32 %v1398_v11  ;;  %v1410_v32 = vand.u32 2147483648, %v1398_v11  ;;  %vm1404_vm3 = vweird.f32 %v1398_v11  ;;  %v1408_v33 = vand.u32 2147483647, %v1398_v11 }
0x1dfa   :  { %v1411_v35 = vor.u32 1.1754944e-38, %v1410_v32  ;;  %vm1409_vm5 = vcmp.eq.f32.partialorder %v1408_v33, 8.507059e+37 }
0x1dfe   :  { %v1873_v40 = vpop.eup %1872 }
0x1dff   :  { %v1400_v27 = vmul.f32 %v1873_v40, %v1398_v11  ;;  %vm1405_vm2 = vweird.f32 %v1873_v40 }
0x1e00   :  { %vm1406_vm4 = vmor %vm1404_vm3, %vm1405_vm2 }
0x1e01   :  { %v1401_v28 = vsub.f32 1.0, %v1400_v27 }
0x1e03   :  { %v1402_v29 = vmul.f32 %v1873_v40, %v1401_v28 }
0x1e05   :  { %v1403_v30 = vadd.f32 %v1873_v40, %v1402_v29 }
0x1e07   :  { %v1407_v34 = vsel %vm1406_vm4, %v1873_v40, %v1403_v30 }
0x1e08   :  { %v1412_v37 = vsel %vm1409_vm5, %v1411_v35, %v1407_v34  ;;  %vm1577_vm5 = vcmask 1041408  }
0x1e09   :  { %v1426_v52 = vsub.f32 1.0, %v1412_v37  ;;  %v1432_v12 = vmul.f32 %v1412_v37, %v2224_v56 }
0x1e5f   :  { %v1417_v36 = vpop.permute.xlu1 %1416 }
0x1e60   :  { %v1419_v38 = vmul.f32 %v1417_v36, %v1412_v37 }
0x1e62   :  { %1421 = vrot.lane.b32.xlu0 %v1419_v38, %s1901_s23 }
0x1e67   :  { %v1104_v41 = vpop.permute.xlu1 %1103 }
0x1e68   :  { %v1106_v43 = vmul.f32 %v1104_v41, %v1101_v39 }
0x1e6a   :  { %v2240_v44 = vadd.f32 %v1107_v42, %v1106_v43 }
0x1e6c   :  { %1175 = vrot.lane.b32.xlu0 %v2240_v44, %s1903_s26 }
0x1ed4   :  { %v1422_v46 = vpop.permute.xlu0 %1421 }
0x1ed5   :  { %v1424_v47 = vadd.f32 %v1422_v46, %v2122_v31 }
0x1ed7   :  { %1874 = vtanh.f32 %v1424_v47 }
0x1edd   :  { %v1875_v49 = vpop.eup %1874 }
0x1ede   :  { %1428 = vrot.lane.b32.xlu2 %v1875_v49, %s1903_s26  ;;  %v1176_v51 = vpop.permute.xlu0 %1175 }
0x1edf   :  { %1746 = vmatmul.msk.f32.vlgmr.msrb.gmra.mxu0 %vm65_vm6, %v1176_v51 }
0x1f38   :  { %v1429_v53 = vpop.permute.xlu2 %1428 }
0x1f39   :  { %v1431_v8 = vmul.f32 %v1429_v53, %v1426_v52 }
0x1f3b   :  { %v2248_v57 = vadd.f32 %v1432_v12, %v1431_v8 }
0x1f3d   :  { %1435 = vrot.lane.b32.xlu1 %v2248_v57, %s1903_s26 }
0x1f5c   :  { %v1196_v59 = vpop.f32.mrf.mxu0 }
0x1f5d   :  { %v1219_v60 = vadd.f32 %v1196_v59, %v2164_v50  ;;  %v1199_v0 = vadd.f32 %v1196_v59, %v2171_v54 }
0x1f5f   :  { %1221 = vrot.lane.b32.xlu2 %v1219_v60, %s1901_s23  ;;  %v1747_v13 = vmul.f32 -1.442695, %v1199_v0 }
0x1f61   :  { %1876 = vpow2.f32 %v1747_v13 }
0x1f67   :  { %v1877_v3 = vpop.eup %1876 }
0x1f68   :  { %v1203_v5 = vadd.f32 1.0, %v1877_v3 }
0x1f6a   :  { %1878 = vrcp.f32 %v1203_v5  ;;  %v1215_v6 = vand.u32 2147483648, %v1203_v5  ;;  %vm1209_vm8 = vweird.f32 %v1203_v5  ;;  %v1213_v7 = vand.u32 2147483647, %v1203_v5 }
0x1f6c   :  { %v1216_v14 = vor.u32 1.1754944e-38, %v1215_v6  ;;  %vm1214_vm10 = vcmp.eq.f32.partialorder %v1213_v7, 8.507059e+37 }
0x1f70   :  { %v1879_v61 = vpop.eup %1878 }
0x1f71   :  { %v1205_v62 = vmul.f32 %v1879_v61, %v1203_v5  ;;  %vm1210_vm7 = vweird.f32 %v1879_v61 }
0x1f72   :  { %vm1211_vm9 = vmor %vm1209_vm8, %vm1210_vm7  ;;  %vm1580_vm7 = vcmask 1045504  }
0x1f73   :  { %v1206_v63 = vsub.f32 1.0, %v1205_v62 }
0x1f75   :  { %v1207_v1 = vmul.f32 %v1879_v61, %v1206_v63 }
0x1f77   :  { %v1208_v4 = vadd.f32 %v1879_v61, %v1207_v1 }
0x1f79   :  { %v1212_v9 = vsel %vm1211_vm9, %v1879_v61, %v1208_v4 }
0x1f7a   :  { %v1217_v15 = vsel %vm1214_vm10, %v1216_v14, %v1212_v9 }
0x1f7b   :  { %v1231_v41 = vsub.f32 1.0, %v1217_v15  ;;  %v1237_v43 = vmul.f32 %v1217_v15, %v2240_v44 }
0x1faf   :  { %v1436_v2 = vpop.permute.xlu1 %1435 }
0x1fb0   :  { %1754 = vmatmul.msk.f32.vlgmr.msra.gmra.mxu0 %vm65_vm6, %v1436_v2 }
0x1fb9   :  { %v1222_v16 = vpop.permute.xlu2 %1221 }
0x1fba   :  { %v1224_v17 = vmul.f32 %v1222_v16, %v1217_v15 }
0x1fbc   :  { %1226 = vrot.lane.b32.xlu1 %v1224_v17, %s1901_s23 }
0x202d   :  { %v1456_v18 = vpop.f32.mrf.mxu0 }
0x202e   :  { %v1479_v19 = vadd.f32 %v1456_v18, %v2108_v24  ;;  %v1227_v20 = vpop.permute.xlu1 %1226  ;;  %v1459_v23 = vadd.f32 %v1456_v18, %v2122_v31 }
0x202f   :  { %v1229_v21 = vadd.f32 %v1227_v20, %v2171_v54 }
0x2030   :  { %1481 = vrot.lane.b32.xlu0 %v1479_v19, %s1901_s23  ;;  %v1755_v25 = vmul.f32 -1.442695, %v1459_v23 }
0x2031   :  { %1880 = vtanh.f32 %v1229_v21 }
0x2032   :  { %1882 = vpow2.f32 %v1755_v25 }
0x2037   :  { %v1881_v22 = vpop.eup %1880 }
0x2038   :  { %1233 = vrot.lane.b32.xlu0 %v1881_v22, %s1903_s26  ;;  %v1883_v11 = vpop.eup %1882 }
0x2039   :  { %v1463_v40 = vadd.f32 1.0, %v1883_v11  ;;  %v1564_v11 = vrot.slane %v2145_v26, 6 }
0x203b   :  { %1884 = vrcp.f32 %v1463_v40  ;;  %v1475_v33 = vand.u32 2147483648, %v1463_v40  ;;  %vm1469_vm12 = vweird.f32 %v1463_v40  ;;  %v1473_v34 = vand.u32 2147483647, %v1463_v40 }
0x203d   :  { %v1476_v36 = vor.u32 1.1754944e-38, %v1475_v33  ;;  %vm1474_vm14 = vcmp.eq.f32.partialorder %v1473_v34, 8.507059e+37  ;;  %v1596_v34 = vld [vmem:[%s2375_s1 + $0xc0] sm:$0xff] }
0x2041   :  { %v1885_v27 = vpop.eup %1884 }
0x2042   :  { %v1465_v28 = vmul.f32 %v1885_v27, %v1463_v40  ;;  %vm1470_vm11 = vweird.f32 %v1885_v27  ;;  %v1566_v40 = vrot.slane %v2175_v10, 4 }
0x2043   :  { %vm1471_vm13 = vmor %vm1469_vm12, %vm1470_vm11  ;;  %vm1705_vm12 = vcmask 25600  }
0x2044   :  { %v1466_v29 = vsub.f32 1.0, %v1465_v28 }
0x2046   :  { %v1467_v30 = vmul.f32 %v1885_v27, %v1466_v29 }
0x2048   :  { %v1468_v32 = vadd.f32 %v1885_v27, %v1467_v30 }
0x204a   :  { %v1472_v35 = vsel %vm1471_vm13, %v1885_v27, %v1468_v32  ;;  %v1568_v27 = vrot.slane %v2200_v58, 2  ;;  %v1597_v58 = vld [vmem:[%s2375_s1 + $0xc8] sm:$0xff] }
0x204b   :  { %v1477_v38 = vsel %vm1474_vm14, %v1476_v36, %v1472_v35  ;;  %1621 = vmatpush.msrb.mxu2 %v1597_v58  ;;  %v1595_v35 = vld [vmem:[%s2375_s1 + $0xb8] sm:$0xff]  ;;  %v1594_v36 = vld [vmem:[%s2375_s1 + $0xb0] sm:$0xff] }
0x204c   :  { %v1491_v12 = vsub.f32 1.0, %v1477_v38  ;;  %v1497_v59 = vmul.f32 %v1477_v38, %v2248_v57 }
0x204d   :  { %1622 = vmatpush.msrb.mxu2 %v1596_v34 }
0x204f   :  { %1623 = vmatpush.msrb.mxu2 %v1595_v35 }
0x2051   :  { %1624 = vmatpush.msrb.mxu2 %v1594_v36 }
0x20a2   :  { %v1482_v37 = vpop.permute.xlu0 %1481 }
0x20a3   :  { %v1484_v39 = vmul.f32 %v1482_v37, %v1477_v38 }
0x20a5   :  { %1486 = vrot.lane.b32.xlu2 %v1484_v39, %s1901_s23 }
0x20aa   :  { %v1234_v42 = vpop.permute.xlu0 %1233 }
0x20ab   :  { %v1236_v46 = vmul.f32 %v1234_v42, %v1231_v41 }
0x20ad   :  { %v2264_v47 = vadd.f32 %v1237_v43, %v1236_v46  ;;  %v1585_v46 = vrot.slane %v2216_v45, 6 }
0x20af   :  { %1305 = vrot.lane.b32.xlu2 %v2264_v47, %s1903_s26 }
0x20ff   :  { %v1487_v49 = vpop.permute.xlu2 %1486 }
0x2100   :  { %v1489_v51 = vadd.f32 %v1487_v49, %v2122_v31 }
0x2102   :  { %1886 = vtanh.f32 %v1489_v51 }
0x2108   :  { %v1887_v52 = vpop.eup %1886 }
0x2109   :  { %1493 = vrot.lane.b32.xlu1 %v1887_v52, %s1903_s26  ;;  %v1306_v53 = vpop.permute.xlu2 %1305  ;;  %v1587_v52 = vrot.slane %v2240_v44, 4  ;;  %v1637_v44 = vld [vmem:[%s2375_s1 + $0xe8] sm:$0xff] }
0x210a   :  { %1750 = vmatmul.msk.f32.vlgmr.msra.gmra.mxu2 %vm65_vm6, %v1306_v53  ;;  %1661 = vmatpush.msra.mxu3 %v1637_v44 }
0x217b   :  { %v1494_v8 = vpop.permute.xlu1 %1493 }
0x217c   :  { %v1496_v60 = vmul.f32 %v1494_v8, %v1491_v12  ;;  %v1589_v12 = vrot.slane %v2264_v47, 2  ;;  %v1591_v8 = vsel %vm1577_vm5, %v2188_v48, %v1585_v46  ;;  %v1636_v48 = vld [vmem:[%s2375_s1 + $0xe0] sm:$0xff] }
0x217d   :  { %1662 = vmatpush.msra.mxu3 %v1636_v48 }
0x217e   :  { %v2272_v0 = vadd.f32 %v1497_v59, %v1496_v60  ;;  %v1592_v59 = vsel %vm34_vm0, %v1591_v8, %v1587_v52 }
0x217f   :  { %v1593_v60 = vsel %vm1580_vm7, %v1592_v59, %v1589_v12 }
0x2180   :  { %1500 = vrot.lane.b32.xlu0 %v2272_v0, %s1903_s26 }
0x218d   :  { %v1326_v13 = vpop.f32.mrf.mxu2 }
0x218e   :  { %v1349_v3 = vadd.f32 %v1326_v13, %v2164_v50  ;;  %v1329_v5 = vadd.f32 %v1326_v13, %v2171_v54  ;;  %v1632_v13 = vmax.f32 %v1593_v60, 0.0 }
0x2190   :  { %1351 = vrot.lane.b32.xlu1 %v1349_v3, %s1901_s23  ;;  %v1751_v61 = vmul.f32 -1.442695, %v1329_v5  ;;  %v1635_v5 = vld [vmem:[%s2375_s1 + $0xd8] sm:$0xff] }
0x2191   :  { %1663 = vmatpush.msra.mxu3 %v1635_v5 }
0x2192   :  { %1888 = vpow2.f32 %v1751_v61  ;;  %v1634_v61 = vld [vmem:[%s2375_s1 + $0xd0] sm:$0xff] }
0x2193   :  { %1664 = vmatpush.msra.mxu3 %v1634_v61 }
0x2198   :  { %v1889_v62 = vpop.eup %1888 }
0x2199   :  { %v1333_v63 = vadd.f32 1.0, %v1889_v62 }
0x219b   :  { %1890 = vrcp.f32 %v1333_v63  ;;  %v1345_v14 = vand.u32 2147483648, %v1333_v63  ;;  %vm1339_vm2 = vweird.f32 %v1333_v63  ;;  %v1343_v50 = vand.u32 2147483647, %v1333_v63 }
0x219d   :  { %v1346_v16 = vor.u32 1.1754944e-38, %v1345_v14  ;;  %vm1344_vm4 = vcmp.eq.f32.partialorder %v1343_v50, 8.507059e+37 }
0x21a1   :  { %v1891_v1 = vpop.eup %1890 }
0x21a2   :  { %v1335_v2 = vmul.f32 %v1891_v1, %v1333_v63  ;;  %vm1340_vm15 = vweird.f32 %v1891_v1 }
0x21a3   :  { %vm1341_vm3 = vmor %vm1339_vm2, %vm1340_vm15 }
0x21a4   :  { %v1336_v6 = vsub.f32 1.0, %v1335_v2 }
0x21a6   :  { %v1337_v7 = vmul.f32 %v1891_v1, %v1336_v6 }
0x21a8   :  { %v1338_v9 = vadd.f32 %v1891_v1, %v1337_v7 }
0x21aa   :  { %v1342_v15 = vsel %vm1341_vm3, %v1891_v1, %v1338_v9 }
0x21ab   :  { %v2280_v18 = vsel %vm1344_vm4, %v1346_v16, %v1342_v15 }
0x21ac   :  { %v1361_v1 = vsub.f32 1.0, %v2280_v18  ;;  %v1367_v7 = vmul.f32 %v2280_v18, %v2264_v47  ;;  %v1570_v47 = vrot.slane %v2248_v57, 6  ;;  %v1773_v57 = vld [vmem:[%s2375_s1 + $0xf2] ss:$0 sm:$0xff] }
0x21f2   :  { %v1501_v4 = vpop.permute.xlu0 %1500 }
0x21f3   :  { %1756 = vmatmul.msk.f32.vlgmr.msra.gmra.mxu1 %vm65_vm6, %v1501_v4 }
0x2202   :  { %v1352_v17 = vpop.permute.xlu1 %1351 }
0x2203   :  { %v1354_v19 = vmul.f32 %v1352_v17, %v2280_v18 }
0x2205   :  { %1356 = vrot.lane.b32.xlu0 %v1354_v19, %s1901_s23 }
0x2270   :  { %v1521_v20 = vpop.f32.mrf.mxu1 }
0x2271   :  { %v1544_v21 = vadd.f32 %v1521_v20, %v2108_v24  ;;  %v1578_v24 = vsel %vm1577_vm5, %v2129_v55, %v1564_v11 }
0x2272   :  { %v1579_v28 = vsel %vm34_vm0, %v1578_v24, %v1566_v40 }
0x2273   :  { %1546 = vrot.lane.b32.xlu2 %v1544_v21, %s1901_s23  ;;  %v1581_v29 = vsel %vm1580_vm7, %v1579_v28, %v1568_v27 }
0x2277   :  { %v1357_v22 = vpop.permute.xlu0 %1356 }
0x2278   :  { %v1359_v23 = vadd.f32 %v1357_v22, %v2171_v54  ;;  %v1524_v54 = vadd.f32 %v1521_v20, %v2122_v31  ;;  %v1572_v20 = vrot.slane %v2272_v0, 4 }
0x227a   :  { %1892 = vtanh.f32 %v1359_v23  ;;  %v1757_v30 = vmul.f32 -1.442695, %v1524_v54  ;;  %v1582_v23 = vsel %vm1577_vm5, %v2224_v56, %v1570_v47  ;;  %v1900_v56 = vld [vmem:[%s2376_s0 + $0x8] sm:$0xff] }
0x227c   :  { %1894 = vpow2.f32 %v1757_v30 }
0x2280   :  { %v1893_v25 = vpop.eup %1892 }
0x2281   :  { %1363 = vrot.lane.b32.xlu2 %v1893_v25, %s1903_s26  ;;  %v1583_v25 = vsel %vm34_vm0, %v1582_v23, %v1572_v20 }
0x2282   :  { %v1895_v26 = vpop.eup %1894 }
0x2283   :  { %v1528_v32 = vadd.f32 1.0, %v1895_v26 }
0x2285   :  { %1896 = vrcp.f32 %v1528_v32  ;;  %v1540_v39 = vand.u32 2147483648, %v1528_v32  ;;  %vm1534_vm9 = vweird.f32 %v1528_v32  ;;  %v1538_v41 = vand.u32 2147483647, %v1528_v32 }
0x2287   :  { %v1541_v43 = vor.u32 1.1754944e-38, %v1540_v39  ;;  %vm1539_vm11 = vcmp.eq.f32.partialorder %v1538_v41, 8.507059e+37 }
0x2289   :  { %1601 = vrot.lane.b32.xlu2 %v1581_v29, %s1903_s26 }
0x228b   :  { %v1897_v10 = vpop.eup %1896 }
0x228c   :  { %v1530_v33 = vmul.f32 %v1897_v10, %v1528_v32  ;;  %vm1535_vm8 = vweird.f32 %v1897_v10 }
0x228d   :  { %vm1536_vm10 = vmor %vm1534_vm9, %vm1535_vm8 }
0x228e   :  { %v1531_v55 = vsub.f32 1.0, %v1530_v33 }
0x2290   :  { %v1532_v37 = vmul.f32 %v1897_v10, %v1531_v55 }
0x2292   :  { %v1533_v38 = vadd.f32 %v1897_v10, %v1532_v37 }
0x2294   :  { %v1537_v42 = vsel %vm1536_vm10, %v1897_v10, %v1533_v38 }
0x2295   :  { %v1542_v49 = vsel %vm1539_vm11, %v1541_v43, %v1537_v42 }
0x2296   :  { %v1556_v16 = vsub.f32 1.0, %v1542_v49  ;;  %v1562_v18 = vmul.f32 %v1542_v49, %v2272_v0 }
0x22cd   :  { %v1547_v51 = vpop.permute.xlu2 %1546 }
0x22ce   :  { %v1549_v53 = vmul.f32 %v1547_v51, %v1542_v49 }
0x22d0   :  { %1551 = vrot.lane.b32.xlu1 %v1549_v53, %s1901_s23 }
0x22d8   :  { %1641 = vrot.lane.b32.xlu1 %v1632_v13, %s1903_s26 }
0x22db   :  { %v1364_v45 = vpop.permute.xlu2 %1363 }
0x22dc   :  { %v1366_v2 = vmul.f32 %v1364_v45, %v1361_v1 }
0x22de   :  { %v1368_v9 = vadd.f32 %v1367_v7, %v1366_v2 }
0x22e0   :  { %v1633_v14 = vmax.f32 %v1368_v9, 0.0 }
0x22e3   :  { %v1602_v3 = vpop.permute.xlu2 %1601 }
0x22e4   :  { %1758 = vmatmul.msk.f32.vlgmr.msrb.gmra.mxu2 %vm65_vm6, %v1602_v3 }
0x2342   :  { %v1552_v62 = vpop.permute.xlu1 %1551 }
0x2343   :  { %v1554_v63 = vadd.f32 %v1552_v62, %v2122_v31  ;;  %v1772_v31 = vld [vmem:[%s2375_s1 + $0xf1] ss:$0 sm:$0xff] }
0x2345   :  { %1898 = vtanh.f32 %v1554_v63 }
0x234a   :  { %v1642_v4 = vpop.permute.xlu1 %1641 }
0x234b   :  { %v1899_v6 = vpop.eup %1898  ;;  %1760 = vmatmul.msk.f32.vlgmr.msra.gmra.mxu3 %vm65_vm6, %v1642_v4 }
0x234c   :  { %1558 = vrot.lane.b32.xlu0 %v1899_v6, %s1903_s26 }
0x2354   :  { %1643 = vrot.lane.b32.xlu0 %v1633_v14, %s1903_s26 }
0x2367   :  { %v1626_v50 = vpop.f32.mrf.mxu2 }
0x2368   :  { %v1627_v15 = vadd.f32 %v1772_v31, %v1626_v50 }
0x236a   :  { %1702 = vst.msk [vmem:[%s2377_s2] sm:$0xff] %vm27_vm1, %v1627_v15 }
0x23be   :  { %v1559_v17 = vpop.permute.xlu0 %1558 }
0x23bf   :  { %v1561_v19 = vmul.f32 %v1559_v17, %v1556_v16 }
0x23c1   :  { %v1563_v21 = vadd.f32 %v1562_v18, %v1561_v19 }
0x23c3   :  { %v1575_v22 = vrot.slane %v1563_v21, 2 }
0x23c5   :  { %v1584_v11 = vsel %vm1580_vm7, %v1583_v25, %v1575_v22 }
0x23c6   :  { %1603 = vrot.lane.b32.xlu1 %v1584_v11, %s1903_s26  ;;  %v1644_v40 = vpop.permute.xlu0 %1643 }
0x23c7   :  { %1761 = vmatmul.msk.f32.gmra.mxu3 %vm65_vm6, %v1644_v40 }
0x23ce   :  { %v1666_v27 = vpop.f32.mrf.mxu3 }
0x23cf   :  { %v1667_v0 = vadd.f32 %v1773_v57, %v1666_v27 }
0x23d1   :  { %v1673_v24 = vrot.slane %v1667_v0, 2  ;;  %v1676_v29 = vrot.slane %v1667_v0, 4  ;;  %v1679_v54 = vrot.slane %v1667_v0, 6 }
0x23d3   :  { %v1675_v28 = vadd.f32 %v1900_v56, %v1673_v24 }
0x23d5   :  { %v1678_v30 = vadd.f32 %v1676_v29, %v1675_v28  ;;  %v1688_v26 = vrot.slane %v1675_v28, 6 }
0x23d7   :  { %v1681_v32 = vadd.f32 %v1679_v54, %v1678_v30  ;;  %v1691_v10 = vrot.slane %v1678_v30, 4 }
0x23d9   :  { %v1682_v33 = vadd.f32 %v1681_v32, %v1667_v0  ;;  %v1694_v58 = vrot.slane %v1681_v32, 2  ;;  %v1699_v55 = vsel %vm1577_vm5, %v1688_v26, %v1691_v10 }
0x23db   :  { %v1700_v34 = vsel %vm34_vm0, %v1699_v55, %v1694_v58 }
0x23dc   :  { %v1701_v35 = vsel %vm1580_vm7, %v1700_v34, %v1682_v33 }
0x23dd   :  { %1704 = vst.msk [vmem:[%s2377_s2 + $0x10] sm:$0xff] %vm27_vm1, %v1701_v35 }
0x2438   :  { %v1604_v36 = vpop.permute.xlu1 %1603 }
0x2439   :  { %1759 = vmatmul.msk.f32.gmra.mxu2 %vm65_vm6, %v1604_v36 }
0x244a   :  { %v1669_v37 = vpop.f32.mrf.mxu3 }
0x244b   :  { %v1670_v38 = vadd.f32 %v1773_v57, %v1669_v37 }
0x244d   :  { %v1684_v39 = vrot.slane %v1670_v38, 2 }
0x244f   :  { %v1686_v41 = vadd.f32 %v1684_v39, %v1682_v33 }
0x2451   :  { %v1697_v42 = vrot.slane %v1686_v41, 6 }
0x2453   :  { %1706 = vst.msk [vmem:[%s2377_s2 + $0x18] sm:$0x3] %vm1705_vm12, %v1697_v42 }
0x24bc   :  { %v1629_v43 = vpop.f32.mrf.mxu2 }
0x24bd   :  { %v1630_v46 = vadd.f32 %v1772_v31, %v1629_v43 }
0x24bf   :  { %1703 = vst.msk [vmem:[%s2377_s2 + $0x8] sm:$0xff] %vm27_vm1, %v1630_v46 }

</bundles_post_ra>
